<compile_context>
chip_gen: v6e
topology: v6e:2x2x1
jax: 0.10.0
libtpu: 0.0.40
codegen_flags: <defaults>
</compile_context>

<pallas_src>
import functools

import jax
import jax.numpy as jnp
from jax.experimental import pallas as pl
from jax.experimental.pallas import tpu as pltpu


def _round_up(x, m):
    return ((x + m - 1) // m) * m


def _lstm_cell(gx_t, h, c, whh_t, H):
    """One PyTorch-convention LSTM step.

    gx_t : (B, 4H) precomputed x_t @ W_ih^T + b_ih + b_hh
    h, c : (B, H)
    whh_t: (H, 4H)
    """
    gates = gx_t + jnp.dot(h, whh_t, preferred_element_type=jnp.float32)
    # One full-width sigmoid covers i/f/o (g's sigmoid lanes are discarded);
    # tanh only on the g slice.  Fewer partial-width EUP pushes per step.
    sg = jax.nn.sigmoid(gates)
    i = sg[:, 0 * H:1 * H]
    f = sg[:, 1 * H:2 * H]
    o = sg[:, 3 * H:4 * H]
    g = jnp.tanh(gates[:, 2 * H:3 * H])
    c_new = f * c + i * g
    h_new = o * jnp.tanh(c_new)
    return h_new, c_new


def fused_autoencoder_kernel(x_ref, wih_e_ref, wih_d_ref, b_e_ref, b_d_ref,
                             whh_e_ref, whh_d_ref, wout_ref, bout_ref,
                             out_ref, hid_ref, *, S, B, E, H, V):
    """x_ref: (S, B, E) time-major block.  out_ref: (B, S*V) batch-major slab.

    hid_ref: (S*B, H) VMEM scratch holding decoder hidden states (streamed
    per step so all S of them are never simultaneously live in vregs).
    """
    f32 = jnp.float32

    x2 = x_ref[...].reshape(S * B, E)                        # merge (S,B) rows
    whh_e = whh_e_ref[...]
    whh_d = whh_d_ref[...]

    # ---- encoder: one hoisted input-projection GEMM, then serial recurrence
    gx_e = jnp.dot(x2, wih_e_ref[...], preferred_element_type=f32) + b_e_ref[...]
    h = jnp.zeros((B, H), f32)
    c = jnp.zeros((B, H), f32)
    for t in range(S):
        h, c = _lstm_cell(gx_e[t * B:(t + 1) * B], h, c, whh_e, H)

    # ---- decoder: input projection deferred to here (bounds live ranges),
    #      seeded with encoder final h and zero cell; h streamed to scratch.
    gx_d = jnp.dot(x2, wih_d_ref[...], preferred_element_type=f32) + b_d_ref[...]
    c = jnp.zeros((B, H), f32)
    for t in range(S):
        h, c = _lstm_cell(gx_d[t * B:(t + 1) * B], h, c, whh_d, H)
        hid_ref[t * B:(t + 1) * B, :] = h

    # ---- hoisted output projection: single GEMM over all timesteps --------
    # TODO(synk): for realistic vocab sizes keep W_out in HBM (pl.ANY) and
    # stream 128-lane V-chunks (emit_pipeline / V grid axis) instead of one
    # (H, V) VMEM block.
    hid = hid_ref[...]                                       # (S*B, H) t-major
    logits = (jnp.dot(hid, wout_ref[...], preferred_element_type=f32)
              + bout_ref[...])                               # (S*B, V)

    # ---- reassemble (S,B)-major rows into a (B, S*V) batch-major slab and
    #      write it with ONE lane-dense store (static lane offsets).
    out_ref[...] = jnp.concatenate(
        [logits[t * B:(t + 1) * B, :] for t in range(S)], axis=1)


def _vmem_budget_bytes(S, BB, E, H, V):
    f = 4  # f32 bytes
    x_blk = 2 * S * BB * E * f                    # double-buffered activations
    w = (2 * E * 4 * H + 2 * H * 4 * H + H * V + 2 * 4 * H + V) * f  # 1-buffered
    out_blk = 2 * BB * (S * V) * f                # double-buffered output
    scratch = S * BB * H * f                      # decoder hidden scratch
    interm = (2 * S * BB * 4 * H + S * BB * V + 6 * BB * H) * f  # gx/logits/state
    est = x_blk + w + out_blk + scratch + interm
    # Leave headroom: >= 32 MiB scoped, but stay well under v7x's 64 MiB.
    return int(min(max(2 * est, 32 << 20), 56 << 20))


def customer_autoencoder_forward(input_seq, params, *, max_batch_tile=128):
    """input_seq: (B, S) int32 token ids. Returns logits (B, S, V) f32."""
    emb_table = params["embedding"]                          # (V, E)
    V, E = emb_table.shape
    H = params["enc_whh_t"].shape[0]
    B, S = input_seq.shape

    # Batch tile: largest multiple of 8 up to max_batch_tile (fills the MXU M
    # dim); pad the batch up to a tile multiple.  At large batch this yields
    # >= 2 "parallel" grid steps, which v7x shards across its two TensorCores.
    BB = min(_round_up(B, 8), _round_up(max_batch_tile, 8))
    Bp = _round_up(B, BB)
    idx = input_seq
    if Bp != B:
        idx = jnp.pad(idx, ((0, Bp - B), (0, 0)))

    # Embedding lookup is a data-dependent gather -> plain JAX glue, produced
    # time-major directly (only the tiny int32 id matrix is transposed).
    x_tm = jnp.take(emb_table, idx.T, axis=0).astype(jnp.float32)   # (S, Bp, E)

    b_e = (params["enc_b_ih"] + params["enc_b_hh"]).reshape(1, 4 * H).astype(jnp.float32)
    b_d = (params["dec_b_ih"] + params["dec_b_hh"]).reshape(1, 4 * H).astype(jnp.float32)
    bout = params["bout"].reshape(1, V).astype(jnp.float32)

    kernel = functools.partial(fused_autoencoder_kernel,
                               S=S, B=BB, E=E, H=H, V=V)

    def wspec(shape):
        # Grid-invariant weight/bias: single-buffered (no wasted VMEM copy).
        return pl.BlockSpec(shape, lambda bi: (0, 0),
                            pipeline_mode=pl.Buffered(1))

    out2d = pl.pallas_call(
        kernel,
        out_shape=jax.ShapeDtypeStruct((Bp, S * V), jnp.float32),
        grid_spec=pltpu.PrefetchScalarGridSpec(
            num_scalar_prefetch=0,
            grid=(Bp // BB,),                                # batch tiles
            in_specs=[
                pl.BlockSpec((S, BB, E), lambda bi: (0, bi, 0)),   # x (time-major)
                wspec((E, 4 * H)),                                 # enc W_ih^T
                wspec((E, 4 * H)),                                 # dec W_ih^T
                wspec((1, 4 * H)),                                 # enc bias
                wspec((1, 4 * H)),                                 # dec bias
                wspec((H, 4 * H)),                                 # enc W_hh^T
                wspec((H, 4 * H)),                                 # dec W_hh^T
                wspec((H, V)),                                     # W_out^T
                wspec((1, V)),                                     # b_out
            ],
            out_specs=pl.BlockSpec((BB, S * V), lambda bi: (bi, 0)),
            scratch_shapes=[pltpu.VMEM((S * BB, H), jnp.float32)],
        ),
        compiler_params=pltpu.CompilerParams(
            dimension_semantics=("parallel",),
            vmem_limit_bytes=_vmem_budget_bytes(S, BB, E, H, V)),
    )(x_tm, params["enc_wih_t"], params["dec_wih_t"], b_e, b_d,
      params["enc_whh_t"], params["dec_whh_t"], params["wout_t"], bout)

    # (Bp, S*V) row-major == (Bp, S, V); drop batch padding.
    return out2d[:B].reshape(B, S, V)


def _reference_forward(input_seq, params):
    """Pure-JAX reference matching the PyTorch module (for verification)."""
    emb = params["embedding"]
    H = params["enc_whh_t"].shape[0]
    x = jnp.take(emb, input_seq, axis=0).astype(jnp.float32)        # (B, S, E)
    B = x.shape[0]
    z = jnp.zeros((B, H), jnp.float32)

    def run_lstm(x_bse, wih_t, whh_t, b, h0, c0):
        def step(carry, x_t):
            h, c = carry
            gates = x_t @ wih_t + h @ whh_t + b
            i = jax.nn.sigmoid(gates[:, 0 * H:1 * H])
            f = jax.nn.sigmoid(gates[:, 1 * H:2 * H])
            g = jnp.tanh(gates[:, 2 * H:3 * H])
            o = jax.nn.sigmoid(gates[:, 3 * H:4 * H])
            c = f * c + i * g
            h = o * jnp.tanh(c)
            return (h, c), h
        (h, _), hs = jax.lax.scan(step, (h0, c0), jnp.swapaxes(x_bse, 0, 1))
        return h, jnp.swapaxes(hs, 0, 1)                    # final h, (B,S,H)

    b_e = params["enc_b_ih"] + params["enc_b_hh"]
    b_d = params["dec_b_ih"] + params["dec_b_hh"]
    h_enc, _ = run_lstm(x, params["enc_wih_t"], params["enc_whh_t"], b_e, z, z)
    _, dec_out = run_lstm(x, params["dec_wih_t"], params["dec_whh_t"], b_d, h_enc, z)
    return dec_out @ params["wout_t"] + params["bout"]


def init_params(key, vocab_size, embed_dim, hidden_dim):
    ks = jax.random.split(key, 12)
    sc = 0.1
    return {
        # nn.Embedding(vocab_size, embed_dim)
        "embedding": sc * jax.random.normal(ks[0], (vocab_size, embed_dim), jnp.float32),
        # encoder nn.LSTM(embed_dim, hidden_dim): W_ih (4H,E), W_hh (4H,H) stored transposed
        "enc_wih_t": sc * jax.random.normal(ks[1], (embed_dim, 4 * hidden_dim), jnp.float32),
        "enc_whh_t": sc * jax.random.normal(ks[2], (hidden_dim, 4 * hidden_dim), jnp.float32),
        "enc_b_ih": sc * jax.random.normal(ks[3], (4 * hidden_dim,), jnp.float32),
        "enc_b_hh": sc * jax.random.normal(ks[4], (4 * hidden_dim,), jnp.float32),
        # decoder nn.LSTM(embed_dim, hidden_dim)
        "dec_wih_t": sc * jax.random.normal(ks[5], (embed_dim, 4 * hidden_dim), jnp.float32),
        "dec_whh_t": sc * jax.random.normal(ks[6], (hidden_dim, 4 * hidden_dim), jnp.float32),
        "dec_b_ih": sc * jax.random.normal(ks[7], (4 * hidden_dim,), jnp.float32),
        "dec_b_hh": sc * jax.random.normal(ks[8], (4 * hidden_dim,), jnp.float32),
        # nn.Linear(hidden_dim, vocab_size): W (V,H) stored transposed, b (V,)
        "wout_t": sc * jax.random.normal(ks[9], (hidden_dim, vocab_size), jnp.float32),
        "bout": sc * jax.random.normal(ks[10], (vocab_size,), jnp.float32),
    }


if __name__ == "__main__":
    vocab_size, embed_dim, hidden_dim = 64, 16, 32
    batch, seq_len = 2, 8

    key = jax.random.PRNGKey(0)
    k_param, k_inp = jax.random.split(key)
    params = init_params(k_param, vocab_size, embed_dim, hidden_dim)
    input_seq = jax.random.randint(k_inp, (batch, seq_len), 0, vocab_size,
                                   dtype=jnp.int32)

    logits = customer_autoencoder_forward(input_seq, params)
    logits = jax.block_until_ready(logits)
    assert logits.shape == (batch, seq_len, vocab_size)
    assert logits.dtype == jnp.float32

    ref = _reference_forward(input_seq, params)
    assert float(jnp.max(jnp.abs(logits - ref))) < 1e-4

    print("KERNEL_OK")
</pallas_src>

<mosaic_0001>
module attributes {stable_mosaic.version = 11 : i64} {
  func.func @fused_autoencoder_kernel(%arg0: i32, %arg1: memref<8x8x16xf32, #tpu.memory_space<vmem>>, %arg2: memref<16x128xf32, #tpu.memory_space<vmem>>, %arg3: memref<16x128xf32, #tpu.memory_space<vmem>>, %arg4: memref<1x128xf32, #tpu.memory_space<vmem>>, %arg5: memref<1x128xf32, #tpu.memory_space<vmem>>, %arg6: memref<32x128xf32, #tpu.memory_space<vmem>>, %arg7: memref<32x128xf32, #tpu.memory_space<vmem>>, %arg8: memref<32x64xf32, #tpu.memory_space<vmem>>, %arg9: memref<1x64xf32, #tpu.memory_space<vmem>>, %arg10: memref<8x512xf32, #tpu.memory_space<vmem>>, %arg11: memref<64x32xf32, #tpu.memory_space<vmem>>) attributes {dimension_semantics = [#tpu.dimension_semantics<parallel>], iteration_bounds = array<i64: 1>, scalar_prefetch = 0 : i64, scratch_operands = 1 : i64, tpu.core_type = #tpu.core_type<tc>, window_params = [{transform_indices = @transform_0, window_bounds = array<i64: 8, 8, 16>}, {pipeline_mode = #tpu.pipeline_mode<synchronous>, transform_indices = @transform_1, window_bounds = array<i64: 16, 128>}, {pipeline_mode = #tpu.pipeline_mode<synchronous>, transform_indices = @transform_2, window_bounds = array<i64: 16, 128>}, {pipeline_mode = #tpu.pipeline_mode<synchronous>, transform_indices = @transform_3, window_bounds = array<i64: 1, 128>}, {pipeline_mode = #tpu.pipeline_mode<synchronous>, transform_indices = @transform_4, window_bounds = array<i64: 1, 128>}, {pipeline_mode = #tpu.pipeline_mode<synchronous>, transform_indices = @transform_5, window_bounds = array<i64: 32, 128>}, {pipeline_mode = #tpu.pipeline_mode<synchronous>, transform_indices = @transform_6, window_bounds = array<i64: 32, 128>}, {pipeline_mode = #tpu.pipeline_mode<synchronous>, transform_indices = @transform_7, window_bounds = array<i64: 32, 64>}, {pipeline_mode = #tpu.pipeline_mode<synchronous>, transform_indices = @transform_8, window_bounds = array<i64: 1, 64>}, {transform_indices = @transform_9, window_bounds = array<i64: 8, 512>}]} {
    %c0 = arith.constant 0 : index
    %c0_0 = arith.constant 0 : index
    %c0_1 = arith.constant 0 : index
    %0 = vector.load %arg1[%c0, %c0_0, %c0_1] : memref<8x8x16xf32, #tpu.memory_space<vmem>>, vector<8x8x16xf32>
    %1 = vector.shape_cast %0 : vector<8x8x16xf32> to vector<64x16xf32>
    %c0_2 = arith.constant 0 : index
    %c0_3 = arith.constant 0 : index
    %2 = vector.load %arg6[%c0_2, %c0_3] : memref<32x128xf32, #tpu.memory_space<vmem>>, vector<32x128xf32>
    %c0_4 = arith.constant 0 : index
    %c0_5 = arith.constant 0 : index
    %3 = vector.load %arg7[%c0_4, %c0_5] : memref<32x128xf32, #tpu.memory_space<vmem>>, vector<32x128xf32>
    %c0_6 = arith.constant 0 : index
    %c0_7 = arith.constant 0 : index
    %4 = vector.load %arg2[%c0_6, %c0_7] : memref<16x128xf32, #tpu.memory_space<vmem>>, vector<16x128xf32>
    %cst = arith.constant dense<0.000000e+00> : vector<64x128xf32>
    %5 = tpu.matmul %1, %4, %cst {dimension_numbers = #tpu.dot_dimension_numbers<[1], [0], [0], [1], [0, 0, 1, 1], [], []>} : vector<64x16xf32>, vector<16x128xf32>, vector<64x128xf32> -> vector<64x128xf32>
    %c0_8 = arith.constant 0 : index
    %c0_9 = arith.constant 0 : index
    %6 = vector.load %arg4[%c0_8, %c0_9] : memref<1x128xf32, #tpu.memory_space<vmem>>, vector<1x128xf32>
    %7 = vector.broadcast %6 : vector<1x128xf32> to vector<64x128xf32>
    %8 = arith.addf %5, %7 : vector<64x128xf32>
    %cst_10 = arith.constant 0.000000e+00 : f32
    %9 = vector.broadcast %cst_10 : f32 to vector<8x32xf32>
    %cst_11 = arith.constant 0.000000e+00 : f32
    %10 = vector.broadcast %cst_11 : f32 to vector<8x32xf32>
    %11 = vector.extract_strided_slice %8 {offsets = [0, 0], sizes = [8, 128], strides = [1, 1]} : vector<64x128xf32> to vector<8x128xf32>
    %cst_12 = arith.constant dense<0.000000e+00> : vector<8x128xf32>
    %12 = tpu.matmul %9, %2, %cst_12 {dimension_numbers = #tpu.dot_dimension_numbers<[1], [0], [0], [1], [0, 0, 1, 1], [], []>} : vector<8x32xf32>, vector<32x128xf32>, vector<8x128xf32> -> vector<8x128xf32>
    %13 = arith.addf %11, %12 : vector<8x128xf32>
    %14 = arith.negf %13 : vector<8x128xf32>
    %15 = math.exp %14 : vector<8x128xf32>
    %cst_13 = arith.constant 1.000000e+00 : f32
    %16 = vector.broadcast %cst_13 : f32 to vector<8x128xf32>
    %17 = arith.addf %16, %15 : vector<8x128xf32>
    %18 = arith.divf %16, %17 : vector<8x128xf32>
    %19 = vector.extract_strided_slice %18 {offsets = [0, 0], sizes = [8, 32], strides = [1, 1]} : vector<8x128xf32> to vector<8x32xf32>
    %20 = vector.extract_strided_slice %18 {offsets = [0, 32], sizes = [8, 32], strides = [1, 1]} : vector<8x128xf32> to vector<8x32xf32>
    %21 = vector.extract_strided_slice %18 {offsets = [0, 96], sizes = [8, 32], strides = [1, 1]} : vector<8x128xf32> to vector<8x32xf32>
    %22 = vector.extract_strided_slice %13 {offsets = [0, 64], sizes = [8, 32], strides = [1, 1]} : vector<8x128xf32> to vector<8x32xf32>
    %23 = math.tanh %22 : vector<8x32xf32>
    %24 = arith.mulf %20, %10 : vector<8x32xf32>
    %25 = arith.mulf %19, %23 : vector<8x32xf32>
    %26 = arith.addf %24, %25 : vector<8x32xf32>
    %27 = math.tanh %26 : vector<8x32xf32>
    %28 = arith.mulf %21, %27 : vector<8x32xf32>
    %29 = vector.extract_strided_slice %8 {offsets = [8, 0], sizes = [8, 128], strides = [1, 1]} : vector<64x128xf32> to vector<8x128xf32>
    %cst_14 = arith.constant dense<0.000000e+00> : vector<8x128xf32>
    %30 = tpu.matmul %28, %2, %cst_14 {dimension_numbers = #tpu.dot_dimension_numbers<[1], [0], [0], [1], [0, 0, 1, 1], [], []>} : vector<8x32xf32>, vector<32x128xf32>, vector<8x128xf32> -> vector<8x128xf32>
    %31 = arith.addf %29, %30 : vector<8x128xf32>
    %32 = arith.negf %31 : vector<8x128xf32>
    %33 = math.exp %32 : vector<8x128xf32>
    %cst_15 = arith.constant 1.000000e+00 : f32
    %34 = vector.broadcast %cst_15 : f32 to vector<8x128xf32>
    %35 = arith.addf %34, %33 : vector<8x128xf32>
    %36 = arith.divf %34, %35 : vector<8x128xf32>
    %37 = vector.extract_strided_slice %36 {offsets = [0, 0], sizes = [8, 32], strides = [1, 1]} : vector<8x128xf32> to vector<8x32xf32>
    %38 = vector.extract_strided_slice %36 {offsets = [0, 32], sizes = [8, 32], strides = [1, 1]} : vector<8x128xf32> to vector<8x32xf32>
    %39 = vector.extract_strided_slice %36 {offsets = [0, 96], sizes = [8, 32], strides = [1, 1]} : vector<8x128xf32> to vector<8x32xf32>
    %40 = vector.extract_strided_slice %31 {offsets = [0, 64], sizes = [8, 32], strides = [1, 1]} : vector<8x128xf32> to vector<8x32xf32>
    %41 = math.tanh %40 : vector<8x32xf32>
    %42 = arith.mulf %38, %26 : vector<8x32xf32>
    %43 = arith.mulf %37, %41 : vector<8x32xf32>
    %44 = arith.addf %42, %43 : vector<8x32xf32>
    %45 = math.tanh %44 : vector<8x32xf32>
    %46 = arith.mulf %39, %45 : vector<8x32xf32>
    %47 = vector.extract_strided_slice %8 {offsets = [16, 0], sizes = [8, 128], strides = [1, 1]} : vector<64x128xf32> to vector<8x128xf32>
    %cst_16 = arith.constant dense<0.000000e+00> : vector<8x128xf32>
    %48 = tpu.matmul %46, %2, %cst_16 {dimension_numbers = #tpu.dot_dimension_numbers<[1], [0], [0], [1], [0, 0, 1, 1], [], []>} : vector<8x32xf32>, vector<32x128xf32>, vector<8x128xf32> -> vector<8x128xf32>
    %49 = arith.addf %47, %48 : vector<8x128xf32>
    %50 = arith.negf %49 : vector<8x128xf32>
    %51 = math.exp %50 : vector<8x128xf32>
    %cst_17 = arith.constant 1.000000e+00 : f32
    %52 = vector.broadcast %cst_17 : f32 to vector<8x128xf32>
    %53 = arith.addf %52, %51 : vector<8x128xf32>
    %54 = arith.divf %52, %53 : vector<8x128xf32>
    %55 = vector.extract_strided_slice %54 {offsets = [0, 0], sizes = [8, 32], strides = [1, 1]} : vector<8x128xf32> to vector<8x32xf32>
    %56 = vector.extract_strided_slice %54 {offsets = [0, 32], sizes = [8, 32], strides = [1, 1]} : vector<8x128xf32> to vector<8x32xf32>
    %57 = vector.extract_strided_slice %54 {offsets = [0, 96], sizes = [8, 32], strides = [1, 1]} : vector<8x128xf32> to vector<8x32xf32>
    %58 = vector.extract_strided_slice %49 {offsets = [0, 64], sizes = [8, 32], strides = [1, 1]} : vector<8x128xf32> to vector<8x32xf32>
    %59 = math.tanh %58 : vector<8x32xf32>
    %60 = arith.mulf %56, %44 : vector<8x32xf32>
    %61 = arith.mulf %55, %59 : vector<8x32xf32>
    %62 = arith.addf %60, %61 : vector<8x32xf32>
    %63 = math.tanh %62 : vector<8x32xf32>
    %64 = arith.mulf %57, %63 : vector<8x32xf32>
    %65 = vector.extract_strided_slice %8 {offsets = [24, 0], sizes = [8, 128], strides = [1, 1]} : vector<64x128xf32> to vector<8x128xf32>
    %cst_18 = arith.constant dense<0.000000e+00> : vector<8x128xf32>
    %66 = tpu.matmul %64, %2, %cst_18 {dimension_numbers = #tpu.dot_dimension_numbers<[1], [0], [0], [1], [0, 0, 1, 1], [], []>} : vector<8x32xf32>, vector<32x128xf32>, vector<8x128xf32> -> vector<8x128xf32>
    %67 = arith.addf %65, %66 : vector<8x128xf32>
    %68 = arith.negf %67 : vector<8x128xf32>
    %69 = math.exp %68 : vector<8x128xf32>
    %cst_19 = arith.constant 1.000000e+00 : f32
    %70 = vector.broadcast %cst_19 : f32 to vector<8x128xf32>
    %71 = arith.addf %70, %69 : vector<8x128xf32>
    %72 = arith.divf %70, %71 : vector<8x128xf32>
    %73 = vector.extract_strided_slice %72 {offsets = [0, 0], sizes = [8, 32], strides = [1, 1]} : vector<8x128xf32> to vector<8x32xf32>
    %74 = vector.extract_strided_slice %72 {offsets = [0, 32], sizes = [8, 32], strides = [1, 1]} : vector<8x128xf32> to vector<8x32xf32>
    %75 = vector.extract_strided_slice %72 {offsets = [0, 96], sizes = [8, 32], strides = [1, 1]} : vector<8x128xf32> to vector<8x32xf32>
    %76 = vector.extract_strided_slice %67 {offsets = [0, 64], sizes = [8, 32], strides = [1, 1]} : vector<8x128xf32> to vector<8x32xf32>
    %77 = math.tanh %76 : vector<8x32xf32>
    %78 = arith.mulf %74, %62 : vector<8x32xf32>
    %79 = arith.mulf %73, %77 : vector<8x32xf32>
    %80 = arith.addf %78, %79 : vector<8x32xf32>
    %81 = math.tanh %80 : vector<8x32xf32>
    %82 = arith.mulf %75, %81 : vector<8x32xf32>
    %83 = vector.extract_strided_slice %8 {offsets = [32, 0], sizes = [8, 128], strides = [1, 1]} : vector<64x128xf32> to vector<8x128xf32>
    %cst_20 = arith.constant dense<0.000000e+00> : vector<8x128xf32>
    %84 = tpu.matmul %82, %2, %cst_20 {dimension_numbers = #tpu.dot_dimension_numbers<[1], [0], [0], [1], [0, 0, 1, 1], [], []>} : vector<8x32xf32>, vector<32x128xf32>, vector<8x128xf32> -> vector<8x128xf32>
    %85 = arith.addf %83, %84 : vector<8x128xf32>
    %86 = arith.negf %85 : vector<8x128xf32>
    %87 = math.exp %86 : vector<8x128xf32>
    %cst_21 = arith.constant 1.000000e+00 : f32
    %88 = vector.broadcast %cst_21 : f32 to vector<8x128xf32>
    %89 = arith.addf %88, %87 : vector<8x128xf32>
    %90 = arith.divf %88, %89 : vector<8x128xf32>
    %91 = vector.extract_strided_slice %90 {offsets = [0, 0], sizes = [8, 32], strides = [1, 1]} : vector<8x128xf32> to vector<8x32xf32>
    %92 = vector.extract_strided_slice %90 {offsets = [0, 32], sizes = [8, 32], strides = [1, 1]} : vector<8x128xf32> to vector<8x32xf32>
    %93 = vector.extract_strided_slice %90 {offsets = [0, 96], sizes = [8, 32], strides = [1, 1]} : vector<8x128xf32> to vector<8x32xf32>
    %94 = vector.extract_strided_slice %85 {offsets = [0, 64], sizes = [8, 32], strides = [1, 1]} : vector<8x128xf32> to vector<8x32xf32>
    %95 = math.tanh %94 : vector<8x32xf32>
    %96 = arith.mulf %92, %80 : vector<8x32xf32>
    %97 = arith.mulf %91, %95 : vector<8x32xf32>
    %98 = arith.addf %96, %97 : vector<8x32xf32>
    %99 = math.tanh %98 : vector<8x32xf32>
    %100 = arith.mulf %93, %99 : vector<8x32xf32>
    %101 = vector.extract_strided_slice %8 {offsets = [40, 0], sizes = [8, 128], strides = [1, 1]} : vector<64x128xf32> to vector<8x128xf32>
    %cst_22 = arith.constant dense<0.000000e+00> : vector<8x128xf32>
    %102 = tpu.matmul %100, %2, %cst_22 {dimension_numbers = #tpu.dot_dimension_numbers<[1], [0], [0], [1], [0, 0, 1, 1], [], []>} : vector<8x32xf32>, vector<32x128xf32>, vector<8x128xf32> -> vector<8x128xf32>
    %103 = arith.addf %101, %102 : vector<8x128xf32>
    %104 = arith.negf %103 : vector<8x128xf32>
    %105 = math.exp %104 : vector<8x128xf32>
    %cst_23 = arith.constant 1.000000e+00 : f32
    %106 = vector.broadcast %cst_23 : f32 to vector<8x128xf32>
    %107 = arith.addf %106, %105 : vector<8x128xf32>
    %108 = arith.divf %106, %107 : vector<8x128xf32>
    %109 = vector.extract_strided_slice %108 {offsets = [0, 0], sizes = [8, 32], strides = [1, 1]} : vector<8x128xf32> to vector<8x32xf32>
    %110 = vector.extract_strided_slice %108 {offsets = [0, 32], sizes = [8, 32], strides = [1, 1]} : vector<8x128xf32> to vector<8x32xf32>
    %111 = vector.extract_strided_slice %108 {offsets = [0, 96], sizes = [8, 32], strides = [1, 1]} : vector<8x128xf32> to vector<8x32xf32>
    %112 = vector.extract_strided_slice %103 {offsets = [0, 64], sizes = [8, 32], strides = [1, 1]} : vector<8x128xf32> to vector<8x32xf32>
    %113 = math.tanh %112 : vector<8x32xf32>
    %114 = arith.mulf %110, %98 : vector<8x32xf32>
    %115 = arith.mulf %109, %113 : vector<8x32xf32>
    %116 = arith.addf %114, %115 : vector<8x32xf32>
    %117 = math.tanh %116 : vector<8x32xf32>
    %118 = arith.mulf %111, %117 : vector<8x32xf32>
    %119 = vector.extract_strided_slice %8 {offsets = [48, 0], sizes = [8, 128], strides = [1, 1]} : vector<64x128xf32> to vector<8x128xf32>
    %cst_24 = arith.constant dense<0.000000e+00> : vector<8x128xf32>
    %120 = tpu.matmul %118, %2, %cst_24 {dimension_numbers = #tpu.dot_dimension_numbers<[1], [0], [0], [1], [0, 0, 1, 1], [], []>} : vector<8x32xf32>, vector<32x128xf32>, vector<8x128xf32> -> vector<8x128xf32>
    %121 = arith.addf %119, %120 : vector<8x128xf32>
    %122 = arith.negf %121 : vector<8x128xf32>
    %123 = math.exp %122 : vector<8x128xf32>
    %cst_25 = arith.constant 1.000000e+00 : f32
    %124 = vector.broadcast %cst_25 : f32 to vector<8x128xf32>
    %125 = arith.addf %124, %123 : vector<8x128xf32>
    %126 = arith.divf %124, %125 : vector<8x128xf32>
    %127 = vector.extract_strided_slice %126 {offsets = [0, 0], sizes = [8, 32], strides = [1, 1]} : vector<8x128xf32> to vector<8x32xf32>
    %128 = vector.extract_strided_slice %126 {offsets = [0, 32], sizes = [8, 32], strides = [1, 1]} : vector<8x128xf32> to vector<8x32xf32>
    %129 = vector.extract_strided_slice %126 {offsets = [0, 96], sizes = [8, 32], strides = [1, 1]} : vector<8x128xf32> to vector<8x32xf32>
    %130 = vector.extract_strided_slice %121 {offsets = [0, 64], sizes = [8, 32], strides = [1, 1]} : vector<8x128xf32> to vector<8x32xf32>
    %131 = math.tanh %130 : vector<8x32xf32>
    %132 = arith.mulf %128, %116 : vector<8x32xf32>
    %133 = arith.mulf %127, %131 : vector<8x32xf32>
    %134 = arith.addf %132, %133 : vector<8x32xf32>
    %135 = math.tanh %134 : vector<8x32xf32>
    %136 = arith.mulf %129, %135 : vector<8x32xf32>
    %137 = vector.extract_strided_slice %8 {offsets = [56, 0], sizes = [8, 128], strides = [1, 1]} : vector<64x128xf32> to vector<8x128xf32>
    %cst_26 = arith.constant dense<0.000000e+00> : vector<8x128xf32>
    %138 = tpu.matmul %136, %2, %cst_26 {dimension_numbers = #tpu.dot_dimension_numbers<[1], [0], [0], [1], [0, 0, 1, 1], [], []>} : vector<8x32xf32>, vector<32x128xf32>, vector<8x128xf32> -> vector<8x128xf32>
    %139 = arith.addf %137, %138 : vector<8x128xf32>
    %140 = arith.negf %139 : vector<8x128xf32>
    %141 = math.exp %140 : vector<8x128xf32>
    %cst_27 = arith.constant 1.000000e+00 : f32
    %142 = vector.broadcast %cst_27 : f32 to vector<8x128xf32>
    %143 = arith.addf %142, %141 : vector<8x128xf32>
    %144 = arith.divf %142, %143 : vector<8x128xf32>
    %145 = vector.extract_strided_slice %144 {offsets = [0, 0], sizes = [8, 32], strides = [1, 1]} : vector<8x128xf32> to vector<8x32xf32>
    %146 = vector.extract_strided_slice %144 {offsets = [0, 32], sizes = [8, 32], strides = [1, 1]} : vector<8x128xf32> to vector<8x32xf32>
    %147 = vector.extract_strided_slice %144 {offsets = [0, 96], sizes = [8, 32], strides = [1, 1]} : vector<8x128xf32> to vector<8x32xf32>
    %148 = vector.extract_strided_slice %139 {offsets = [0, 64], sizes = [8, 32], strides = [1, 1]} : vector<8x128xf32> to vector<8x32xf32>
    %149 = math.tanh %148 : vector<8x32xf32>
    %150 = arith.mulf %146, %134 : vector<8x32xf32>
    %151 = arith.mulf %145, %149 : vector<8x32xf32>
    %152 = arith.addf %150, %151 : vector<8x32xf32>
    %153 = math.tanh %152 : vector<8x32xf32>
    %154 = arith.mulf %147, %153 : vector<8x32xf32>
    %c0_28 = arith.constant 0 : index
    %c0_29 = arith.constant 0 : index
    %155 = vector.load %arg3[%c0_28, %c0_29] : memref<16x128xf32, #tpu.memory_space<vmem>>, vector<16x128xf32>
    %cst_30 = arith.constant dense<0.000000e+00> : vector<64x128xf32>
    %156 = tpu.matmul %1, %155, %cst_30 {dimension_numbers = #tpu.dot_dimension_numbers<[1], [0], [0], [1], [0, 0, 1, 1], [], []>} : vector<64x16xf32>, vector<16x128xf32>, vector<64x128xf32> -> vector<64x128xf32>
    %c0_31 = arith.constant 0 : index
    %c0_32 = arith.constant 0 : index
    %157 = vector.load %arg5[%c0_31, %c0_32] : memref<1x128xf32, #tpu.memory_space<vmem>>, vector<1x128xf32>
    %158 = vector.broadcast %157 : vector<1x128xf32> to vector<64x128xf32>
    %159 = arith.addf %156, %158 : vector<64x128xf32>
    %cst_33 = arith.constant 0.000000e+00 : f32
    %160 = vector.broadcast %cst_33 : f32 to vector<8x32xf32>
    %161 = vector.extract_strided_slice %159 {offsets = [0, 0], sizes = [8, 128], strides = [1, 1]} : vector<64x128xf32> to vector<8x128xf32>
    %cst_34 = arith.constant dense<0.000000e+00> : vector<8x128xf32>
    %162 = tpu.matmul %154, %3, %cst_34 {dimension_numbers = #tpu.dot_dimension_numbers<[1], [0], [0], [1], [0, 0, 1, 1], [], []>} : vector<8x32xf32>, vector<32x128xf32>, vector<8x128xf32> -> vector<8x128xf32>
    %163 = arith.addf %161, %162 : vector<8x128xf32>
    %164 = arith.negf %163 : vector<8x128xf32>
    %165 = math.exp %164 : vector<8x128xf32>
    %cst_35 = arith.constant 1.000000e+00 : f32
    %166 = vector.broadcast %cst_35 : f32 to vector<8x128xf32>
    %167 = arith.addf %166, %165 : vector<8x128xf32>
    %168 = arith.divf %166, %167 : vector<8x128xf32>
    %169 = vector.extract_strided_slice %168 {offsets = [0, 0], sizes = [8, 32], strides = [1, 1]} : vector<8x128xf32> to vector<8x32xf32>
    %170 = vector.extract_strided_slice %168 {offsets = [0, 32], sizes = [8, 32], strides = [1, 1]} : vector<8x128xf32> to vector<8x32xf32>
    %171 = vector.extract_strided_slice %168 {offsets = [0, 96], sizes = [8, 32], strides = [1, 1]} : vector<8x128xf32> to vector<8x32xf32>
    %172 = vector.extract_strided_slice %163 {offsets = [0, 64], sizes = [8, 32], strides = [1, 1]} : vector<8x128xf32> to vector<8x32xf32>
    %173 = math.tanh %172 : vector<8x32xf32>
    %174 = arith.mulf %170, %160 : vector<8x32xf32>
    %175 = arith.mulf %169, %173 : vector<8x32xf32>
    %176 = arith.addf %174, %175 : vector<8x32xf32>
    %177 = math.tanh %176 : vector<8x32xf32>
    %178 = arith.mulf %171, %177 : vector<8x32xf32>
    %c0_36 = arith.constant 0 : index
    %c0_37 = arith.constant 0 : index
    %179 = vector.load %arg11[%c0_36, %c0_37] : memref<64x32xf32, #tpu.memory_space<vmem>>, vector<8x32xf32>
    tpu.vector_store %arg11[%c0_36, %c0_37], %178 {strides = array<i32>} : memref<64x32xf32, #tpu.memory_space<vmem>>, vector<8x32xf32>,
    %180 = vector.extract_strided_slice %159 {offsets = [8, 0], sizes = [8, 128], strides = [1, 1]} : vector<64x128xf32> to vector<8x128xf32>
    %cst_38 = arith.constant dense<0.000000e+00> : vector<8x128xf32>
    %181 = tpu.matmul %178, %3, %cst_38 {dimension_numbers = #tpu.dot_dimension_numbers<[1], [0], [0], [1], [0, 0, 1, 1], [], []>} : vector<8x32xf32>, vector<32x128xf32>, vector<8x128xf32> -> vector<8x128xf32>
    %182 = arith.addf %180, %181 : vector<8x128xf32>
    %183 = arith.negf %182 : vector<8x128xf32>
    %184 = math.exp %183 : vector<8x128xf32>
    %cst_39 = arith.constant 1.000000e+00 : f32
    %185 = vector.broadcast %cst_39 : f32 to vector<8x128xf32>
    %186 = arith.addf %185, %184 : vector<8x128xf32>
    %187 = arith.divf %185, %186 : vector<8x128xf32>
    %188 = vector.extract_strided_slice %187 {offsets = [0, 0], sizes = [8, 32], strides = [1, 1]} : vector<8x128xf32> to vector<8x32xf32>
    %189 = vector.extract_strided_slice %187 {offsets = [0, 32], sizes = [8, 32], strides = [1, 1]} : vector<8x128xf32> to vector<8x32xf32>
    %190 = vector.extract_strided_slice %187 {offsets = [0, 96], sizes = [8, 32], strides = [1, 1]} : vector<8x128xf32> to vector<8x32xf32>
    %191 = vector.extract_strided_slice %182 {offsets = [0, 64], sizes = [8, 32], strides = [1, 1]} : vector<8x128xf32> to vector<8x32xf32>
    %192 = math.tanh %191 : vector<8x32xf32>
    %193 = arith.mulf %189, %176 : vector<8x32xf32>
    %194 = arith.mulf %188, %192 : vector<8x32xf32>
    %195 = arith.addf %193, %194 : vector<8x32xf32>
    %196 = math.tanh %195 : vector<8x32xf32>
    %197 = arith.mulf %190, %196 : vector<8x32xf32>
    %c8 = arith.constant 8 : index
    %c0_40 = arith.constant 0 : index
    %198 = vector.load %arg11[%c8, %c0_40] : memref<64x32xf32, #tpu.memory_space<vmem>>, vector<8x32xf32>
    tpu.vector_store %arg11[%c8, %c0_40], %197 {strides = array<i32>} : memref<64x32xf32, #tpu.memory_space<vmem>>, vector<8x32xf32>,
    %199 = vector.extract_strided_slice %159 {offsets = [16, 0], sizes = [8, 128], strides = [1, 1]} : vector<64x128xf32> to vector<8x128xf32>
    %cst_41 = arith.constant dense<0.000000e+00> : vector<8x128xf32>
    %200 = tpu.matmul %197, %3, %cst_41 {dimension_numbers = #tpu.dot_dimension_numbers<[1], [0], [0], [1], [0, 0, 1, 1], [], []>} : vector<8x32xf32>, vector<32x128xf32>, vector<8x128xf32> -> vector<8x128xf32>
    %201 = arith.addf %199, %200 : vector<8x128xf32>
    %202 = arith.negf %201 : vector<8x128xf32>
    %203 = math.exp %202 : vector<8x128xf32>
    %cst_42 = arith.constant 1.000000e+00 : f32
    %204 = vector.broadcast %cst_42 : f32 to vector<8x128xf32>
    %205 = arith.addf %204, %203 : vector<8x128xf32>
    %206 = arith.divf %204, %205 : vector<8x128xf32>
    %207 = vector.extract_strided_slice %206 {offsets = [0, 0], sizes = [8, 32], strides = [1, 1]} : vector<8x128xf32> to vector<8x32xf32>
    %208 = vector.extract_strided_slice %206 {offsets = [0, 32], sizes = [8, 32], strides = [1, 1]} : vector<8x128xf32> to vector<8x32xf32>
    %209 = vector.extract_strided_slice %206 {offsets = [0, 96], sizes = [8, 32], strides = [1, 1]} : vector<8x128xf32> to vector<8x32xf32>
    %210 = vector.extract_strided_slice %201 {offsets = [0, 64], sizes = [8, 32], strides = [1, 1]} : vector<8x128xf32> to vector<8x32xf32>
    %211 = math.tanh %210 : vector<8x32xf32>
    %212 = arith.mulf %208, %195 : vector<8x32xf32>
    %213 = arith.mulf %207, %211 : vector<8x32xf32>
    %214 = arith.addf %212, %213 : vector<8x32xf32>
    %215 = math.tanh %214 : vector<8x32xf32>
    %216 = arith.mulf %209, %215 : vector<8x32xf32>
    %c16 = arith.constant 16 : index
    %c0_43 = arith.constant 0 : index
    %217 = vector.load %arg11[%c16, %c0_43] : memref<64x32xf32, #tpu.memory_space<vmem>>, vector<8x32xf32>
    tpu.vector_store %arg11[%c16, %c0_43], %216 {strides = array<i32>} : memref<64x32xf32, #tpu.memory_space<vmem>>, vector<8x32xf32>,
    %218 = vector.extract_strided_slice %159 {offsets = [24, 0], sizes = [8, 128], strides = [1, 1]} : vector<64x128xf32> to vector<8x128xf32>
    %cst_44 = arith.constant dense<0.000000e+00> : vector<8x128xf32>
    %219 = tpu.matmul %216, %3, %cst_44 {dimension_numbers = #tpu.dot_dimension_numbers<[1], [0], [0], [1], [0, 0, 1, 1], [], []>} : vector<8x32xf32>, vector<32x128xf32>, vector<8x128xf32> -> vector<8x128xf32>
    %220 = arith.addf %218, %219 : vector<8x128xf32>
    %221 = arith.negf %220 : vector<8x128xf32>
    %222 = math.exp %221 : vector<8x128xf32>
    %cst_45 = arith.constant 1.000000e+00 : f32
    %223 = vector.broadcast %cst_45 : f32 to vector<8x128xf32>
    %224 = arith.addf %223, %222 : vector<8x128xf32>
    %225 = arith.divf %223, %224 : vector<8x128xf32>
    %226 = vector.extract_strided_slice %225 {offsets = [0, 0], sizes = [8, 32], strides = [1, 1]} : vector<8x128xf32> to vector<8x32xf32>
    %227 = vector.extract_strided_slice %225 {offsets = [0, 32], sizes = [8, 32], strides = [1, 1]} : vector<8x128xf32> to vector<8x32xf32>
    %228 = vector.extract_strided_slice %225 {offsets = [0, 96], sizes = [8, 32], strides = [1, 1]} : vector<8x128xf32> to vector<8x32xf32>
    %229 = vector.extract_strided_slice %220 {offsets = [0, 64], sizes = [8, 32], strides = [1, 1]} : vector<8x128xf32> to vector<8x32xf32>
    %230 = math.tanh %229 : vector<8x32xf32>
    %231 = arith.mulf %227, %214 : vector<8x32xf32>
    %232 = arith.mulf %226, %230 : vector<8x32xf32>
    %233 = arith.addf %231, %232 : vector<8x32xf32>
    %234 = math.tanh %233 : vector<8x32xf32>
    %235 = arith.mulf %228, %234 : vector<8x32xf32>
    %c24 = arith.constant 24 : index
    %c0_46 = arith.constant 0 : index
    %236 = vector.load %arg11[%c24, %c0_46] : memref<64x32xf32, #tpu.memory_space<vmem>>, vector<8x32xf32>
    tpu.vector_store %arg11[%c24, %c0_46], %235 {strides = array<i32>} : memref<64x32xf32, #tpu.memory_space<vmem>>, vector<8x32xf32>,
    %237 = vector.extract_strided_slice %159 {offsets = [32, 0], sizes = [8, 128], strides = [1, 1]} : vector<64x128xf32> to vector<8x128xf32>
    %cst_47 = arith.constant dense<0.000000e+00> : vector<8x128xf32>
    %238 = tpu.matmul %235, %3, %cst_47 {dimension_numbers = #tpu.dot_dimension_numbers<[1], [0], [0], [1], [0, 0, 1, 1], [], []>} : vector<8x32xf32>, vector<32x128xf32>, vector<8x128xf32> -> vector<8x128xf32>
    %239 = arith.addf %237, %238 : vector<8x128xf32>
    %240 = arith.negf %239 : vector<8x128xf32>
    %241 = math.exp %240 : vector<8x128xf32>
    %cst_48 = arith.constant 1.000000e+00 : f32
    %242 = vector.broadcast %cst_48 : f32 to vector<8x128xf32>
    %243 = arith.addf %242, %241 : vector<8x128xf32>
    %244 = arith.divf %242, %243 : vector<8x128xf32>
    %245 = vector.extract_strided_slice %244 {offsets = [0, 0], sizes = [8, 32], strides = [1, 1]} : vector<8x128xf32> to vector<8x32xf32>
    %246 = vector.extract_strided_slice %244 {offsets = [0, 32], sizes = [8, 32], strides = [1, 1]} : vector<8x128xf32> to vector<8x32xf32>
    %247 = vector.extract_strided_slice %244 {offsets = [0, 96], sizes = [8, 32], strides = [1, 1]} : vector<8x128xf32> to vector<8x32xf32>
    %248 = vector.extract_strided_slice %239 {offsets = [0, 64], sizes = [8, 32], strides = [1, 1]} : vector<8x128xf32> to vector<8x32xf32>
    %249 = math.tanh %248 : vector<8x32xf32>
    %250 = arith.mulf %246, %233 : vector<8x32xf32>
    %251 = arith.mulf %245, %249 : vector<8x32xf32>
    %252 = arith.addf %250, %251 : vector<8x32xf32>
    %253 = math.tanh %252 : vector<8x32xf32>
    %254 = arith.mulf %247, %253 : vector<8x32xf32>
    %c32 = arith.constant 32 : index
    %c0_49 = arith.constant 0 : index
    %255 = vector.load %arg11[%c32, %c0_49] : memref<64x32xf32, #tpu.memory_space<vmem>>, vector<8x32xf32>
    tpu.vector_store %arg11[%c32, %c0_49], %254 {strides = array<i32>} : memref<64x32xf32, #tpu.memory_space<vmem>>, vector<8x32xf32>,
    %256 = vector.extract_strided_slice %159 {offsets = [40, 0], sizes = [8, 128], strides = [1, 1]} : vector<64x128xf32> to vector<8x128xf32>
    %cst_50 = arith.constant dense<0.000000e+00> : vector<8x128xf32>
    %257 = tpu.matmul %254, %3, %cst_50 {dimension_numbers = #tpu.dot_dimension_numbers<[1], [0], [0], [1], [0, 0, 1, 1], [], []>} : vector<8x32xf32>, vector<32x128xf32>, vector<8x128xf32> -> vector<8x128xf32>
    %258 = arith.addf %256, %257 : vector<8x128xf32>
    %259 = arith.negf %258 : vector<8x128xf32>
    %260 = math.exp %259 : vector<8x128xf32>
    %cst_51 = arith.constant 1.000000e+00 : f32
    %261 = vector.broadcast %cst_51 : f32 to vector<8x128xf32>
    %262 = arith.addf %261, %260 : vector<8x128xf32>
    %263 = arith.divf %261, %262 : vector<8x128xf32>
    %264 = vector.extract_strided_slice %263 {offsets = [0, 0], sizes = [8, 32], strides = [1, 1]} : vector<8x128xf32> to vector<8x32xf32>
    %265 = vector.extract_strided_slice %263 {offsets = [0, 32], sizes = [8, 32], strides = [1, 1]} : vector<8x128xf32> to vector<8x32xf32>
    %266 = vector.extract_strided_slice %263 {offsets = [0, 96], sizes = [8, 32], strides = [1, 1]} : vector<8x128xf32> to vector<8x32xf32>
    %267 = vector.extract_strided_slice %258 {offsets = [0, 64], sizes = [8, 32], strides = [1, 1]} : vector<8x128xf32> to vector<8x32xf32>
    %268 = math.tanh %267 : vector<8x32xf32>
    %269 = arith.mulf %265, %252 : vector<8x32xf32>
    %270 = arith.mulf %264, %268 : vector<8x32xf32>
    %271 = arith.addf %269, %270 : vector<8x32xf32>
    %272 = math.tanh %271 : vector<8x32xf32>
    %273 = arith.mulf %266, %272 : vector<8x32xf32>
    %c40 = arith.constant 40 : index
    %c0_52 = arith.constant 0 : index
    %274 = vector.load %arg11[%c40, %c0_52] : memref<64x32xf32, #tpu.memory_space<vmem>>, vector<8x32xf32>
    tpu.vector_store %arg11[%c40, %c0_52], %273 {strides = array<i32>} : memref<64x32xf32, #tpu.memory_space<vmem>>, vector<8x32xf32>,
    %275 = vector.extract_strided_slice %159 {offsets = [48, 0], sizes = [8, 128], strides = [1, 1]} : vector<64x128xf32> to vector<8x128xf32>
    %cst_53 = arith.constant dense<0.000000e+00> : vector<8x128xf32>
    %276 = tpu.matmul %273, %3, %cst_53 {dimension_numbers = #tpu.dot_dimension_numbers<[1], [0], [0], [1], [0, 0, 1, 1], [], []>} : vector<8x32xf32>, vector<32x128xf32>, vector<8x128xf32> -> vector<8x128xf32>
    %277 = arith.addf %275, %276 : vector<8x128xf32>
    %278 = arith.negf %277 : vector<8x128xf32>
    %279 = math.exp %278 : vector<8x128xf32>
    %cst_54 = arith.constant 1.000000e+00 : f32
    %280 = vector.broadcast %cst_54 : f32 to vector<8x128xf32>
    %281 = arith.addf %280, %279 : vector<8x128xf32>
    %282 = arith.divf %280, %281 : vector<8x128xf32>
    %283 = vector.extract_strided_slice %282 {offsets = [0, 0], sizes = [8, 32], strides = [1, 1]} : vector<8x128xf32> to vector<8x32xf32>
    %284 = vector.extract_strided_slice %282 {offsets = [0, 32], sizes = [8, 32], strides = [1, 1]} : vector<8x128xf32> to vector<8x32xf32>
    %285 = vector.extract_strided_slice %282 {offsets = [0, 96], sizes = [8, 32], strides = [1, 1]} : vector<8x128xf32> to vector<8x32xf32>
    %286 = vector.extract_strided_slice %277 {offsets = [0, 64], sizes = [8, 32], strides = [1, 1]} : vector<8x128xf32> to vector<8x32xf32>
    %287 = math.tanh %286 : vector<8x32xf32>
    %288 = arith.mulf %284, %271 : vector<8x32xf32>
    %289 = arith.mulf %283, %287 : vector<8x32xf32>
    %290 = arith.addf %288, %289 : vector<8x32xf32>
    %291 = math.tanh %290 : vector<8x32xf32>
    %292 = arith.mulf %285, %291 : vector<8x32xf32>
    %c48 = arith.constant 48 : index
    %c0_55 = arith.constant 0 : index
    %293 = vector.load %arg11[%c48, %c0_55] : memref<64x32xf32, #tpu.memory_space<vmem>>, vector<8x32xf32>
    tpu.vector_store %arg11[%c48, %c0_55], %292 {strides = array<i32>} : memref<64x32xf32, #tpu.memory_space<vmem>>, vector<8x32xf32>,
    %294 = vector.extract_strided_slice %159 {offsets = [56, 0], sizes = [8, 128], strides = [1, 1]} : vector<64x128xf32> to vector<8x128xf32>
    %cst_56 = arith.constant dense<0.000000e+00> : vector<8x128xf32>
    %295 = tpu.matmul %292, %3, %cst_56 {dimension_numbers = #tpu.dot_dimension_numbers<[1], [0], [0], [1], [0, 0, 1, 1], [], []>} : vector<8x32xf32>, vector<32x128xf32>, vector<8x128xf32> -> vector<8x128xf32>
    %296 = arith.addf %294, %295 : vector<8x128xf32>
    %297 = arith.negf %296 : vector<8x128xf32>
    %298 = math.exp %297 : vector<8x128xf32>
    %cst_57 = arith.constant 1.000000e+00 : f32
    %299 = vector.broadcast %cst_57 : f32 to vector<8x128xf32>
    %300 = arith.addf %299, %298 : vector<8x128xf32>
    %301 = arith.divf %299, %300 : vector<8x128xf32>
    %302 = vector.extract_strided_slice %301 {offsets = [0, 0], sizes = [8, 32], strides = [1, 1]} : vector<8x128xf32> to vector<8x32xf32>
    %303 = vector.extract_strided_slice %301 {offsets = [0, 32], sizes = [8, 32], strides = [1, 1]} : vector<8x128xf32> to vector<8x32xf32>
    %304 = vector.extract_strided_slice %301 {offsets = [0, 96], sizes = [8, 32], strides = [1, 1]} : vector<8x128xf32> to vector<8x32xf32>
    %305 = vector.extract_strided_slice %296 {offsets = [0, 64], sizes = [8, 32], strides = [1, 1]} : vector<8x128xf32> to vector<8x32xf32>
    %306 = math.tanh %305 : vector<8x32xf32>
    %307 = arith.mulf %303, %290 : vector<8x32xf32>
    %308 = arith.mulf %302, %306 : vector<8x32xf32>
    %309 = arith.addf %307, %308 : vector<8x32xf32>
    %310 = math.tanh %309 : vector<8x32xf32>
    %311 = arith.mulf %304, %310 : vector<8x32xf32>
    %c56 = arith.constant 56 : index
    %c0_58 = arith.constant 0 : index
    %312 = vector.load %arg11[%c56, %c0_58] : memref<64x32xf32, #tpu.memory_space<vmem>>, vector<8x32xf32>
    tpu.vector_store %arg11[%c56, %c0_58], %311 {strides = array<i32>} : memref<64x32xf32, #tpu.memory_space<vmem>>, vector<8x32xf32>,
    %c0_59 = arith.constant 0 : index
    %c0_60 = arith.constant 0 : index
    %313 = vector.load %arg11[%c0_59, %c0_60] : memref<64x32xf32, #tpu.memory_space<vmem>>, vector<64x32xf32>
    %c0_61 = arith.constant 0 : index
    %c0_62 = arith.constant 0 : index
    %314 = vector.load %arg8[%c0_61, %c0_62] : memref<32x64xf32, #tpu.memory_space<vmem>>, vector<32x64xf32>
    %cst_63 = arith.constant dense<0.000000e+00> : vector<64x64xf32>
    %315 = tpu.matmul %313, %314, %cst_63 {dimension_numbers = #tpu.dot_dimension_numbers<[1], [0], [0], [1], [0, 0, 1, 1], [], []>} : vector<64x32xf32>, vector<32x64xf32>, vector<64x64xf32> -> vector<64x64xf32>
    %c0_64 = arith.constant 0 : index
    %c0_65 = arith.constant 0 : index
    %316 = vector.load %arg9[%c0_64, %c0_65] : memref<1x64xf32, #tpu.memory_space<vmem>>, vector<1x64xf32>
    %317 = vector.broadcast %316 : vector<1x64xf32> to vector<64x64xf32>
    %318 = arith.addf %315, %317 : vector<64x64xf32>
    %319 = vector.extract_strided_slice %318 {offsets = [0, 0], sizes = [8, 64], strides = [1, 1]} : vector<64x64xf32> to vector<8x64xf32>
    %320 = vector.extract_strided_slice %318 {offsets = [8, 0], sizes = [8, 64], strides = [1, 1]} : vector<64x64xf32> to vector<8x64xf32>
    %321 = vector.extract_strided_slice %318 {offsets = [16, 0], sizes = [8, 64], strides = [1, 1]} : vector<64x64xf32> to vector<8x64xf32>
    %322 = vector.extract_strided_slice %318 {offsets = [24, 0], sizes = [8, 64], strides = [1, 1]} : vector<64x64xf32> to vector<8x64xf32>
    %323 = vector.extract_strided_slice %318 {offsets = [32, 0], sizes = [8, 64], strides = [1, 1]} : vector<64x64xf32> to vector<8x64xf32>
    %324 = vector.extract_strided_slice %318 {offsets = [40, 0], sizes = [8, 64], strides = [1, 1]} : vector<64x64xf32> to vector<8x64xf32>
    %325 = vector.extract_strided_slice %318 {offsets = [48, 0], sizes = [8, 64], strides = [1, 1]} : vector<64x64xf32> to vector<8x64xf32>
    %326 = vector.extract_strided_slice %318 {offsets = [56, 0], sizes = [8, 64], strides = [1, 1]} : vector<64x64xf32> to vector<8x64xf32>
    %327 = tpu.concatenate %319, %320, %321, %322, %323, %324, %325, %326 in 1 : vector<8x64xf32>, vector<8x64xf32>, vector<8x64xf32>, vector<8x64xf32>, vector<8x64xf32>, vector<8x64xf32>, vector<8x64xf32>, vector<8x64xf32> -> vector<8x512xf32>
    %c0_66 = arith.constant 0 : index
    %c0_67 = arith.constant 0 : index
    %328 = vector.load %arg10[%c0_66, %c0_67] : memref<8x512xf32, #tpu.memory_space<vmem>>, vector<8x512xf32>
    tpu.vector_store %arg10[%c0_66, %c0_67], %327 {strides = array<i32>} : memref<8x512xf32, #tpu.memory_space<vmem>>, vector<8x512xf32>,
    return
  }
  func.func @transform_0(%arg0: i32) -> (i32, i32, i32) {
    %c0_i32 = arith.constant 0 : i32
    %c0_i32_0 = arith.constant 0 : i32
    %c0_i32_1 = arith.constant 0 : i32
    return %c0_i32, %arg0, %c0_i32_0 : i32, i32, i32
  }
  func.func @transform_1(%arg0: i32) -> (i32, i32) {
    %c0_i32 = arith.constant 0 : i32
    %c0_i32_0 = arith.constant 0 : i32
    %c0_i32_1 = arith.constant 0 : i32
    return %c0_i32, %c0_i32_0 : i32, i32
  }
  func.func @transform_2(%arg0: i32) -> (i32, i32) {
    %c0_i32 = arith.constant 0 : i32
    %c0_i32_0 = arith.constant 0 : i32
    %c0_i32_1 = arith.constant 0 : i32
    return %c0_i32, %c0_i32_0 : i32, i32
  }
  func.func @transform_3(%arg0: i32) -> (i32, i32) {
    %c0_i32 = arith.constant 0 : i32
    %c0_i32_0 = arith.constant 0 : i32
    %c0_i32_1 = arith.constant 0 : i32
    return %c0_i32, %c0_i32_0 : i32, i32
  }
  func.func @transform_4(%arg0: i32) -> (i32, i32) {
    %c0_i32 = arith.constant 0 : i32
    %c0_i32_0 = arith.constant 0 : i32
    %c0_i32_1 = arith.constant 0 : i32
    return %c0_i32, %c0_i32_0 : i32, i32
  }
  func.func @transform_5(%arg0: i32) -> (i32, i32) {
    %c0_i32 = arith.constant 0 : i32
    %c0_i32_0 = arith.constant 0 : i32
    %c0_i32_1 = arith.constant 0 : i32
    return %c0_i32, %c0_i32_0 : i32, i32
  }
  func.func @transform_6(%arg0: i32) -> (i32, i32) {
    %c0_i32 = arith.constant 0 : i32
    %c0_i32_0 = arith.constant 0 : i32
    %c0_i32_1 = arith.constant 0 : i32
    return %c0_i32, %c0_i32_0 : i32, i32
  }
  func.func @transform_7(%arg0: i32) -> (i32, i32) {
    %c0_i32 = arith.constant 0 : i32
    %c0_i32_0 = arith.constant 0 : i32
    %c0_i32_1 = arith.constant 0 : i32
    return %c0_i32, %c0_i32_0 : i32, i32
  }
  func.func @transform_8(%arg0: i32) -> (i32, i32) {
    %c0_i32 = arith.constant 0 : i32
    %c0_i32_0 = arith.constant 0 : i32
    %c0_i32_1 = arith.constant 0 : i32
    return %c0_i32, %c0_i32_0 : i32, i32
  }
  func.func @transform_9(%arg0: i32) -> (i32, i32) {
    %c0_i32 = arith.constant 0 : i32
    %c0_i32_0 = arith.constant 0 : i32
    return %arg0, %c0_i32 : i32, i32
  }
}

</mosaic_0001>

<bundles_post_ra>
// kernel: tpu_custom_call.1
= control target key start
LH: loop header
LB: loop body
LE: loop exit
PB: predicated region body
PF: predicated region fallthrough
CT: control target
= control target key end

     0   :  { %14 = vsyncpa [#allocation4], 0  ;;  %s3364_s0 = inlined_call_operand.hbm [shape: f32[8,8,16], index: 0, kind: input, shape index: {}]   ;;  %s3365_s1 = inlined_call_operand.hbm [shape: f32[16,128], index: 1, kind: input, shape index: {}]   ;;  %s3366_s2 = inlined_call_operand.hbm [shape: f32[16,128], index: 2, kind: input, shape index: {}]   ;;  %s3367_s3 = inlined_call_operand.vmem [shape: f32[1,128], index: 3, kind: input, shape index: {}]   ;;  %s3368_s4 = inlined_call_operand.vmem [shape: f32[1,128], index: 4, kind: input, shape index: {}]   ;;  %s3369_s5 = inlined_call_operand.hbm [shape: f32[32,128], index: 5, kind: input, shape index: {}]   ;;  %s3370_s6 = inlined_call_operand.hbm [shape: f32[32,128], index: 6, kind: input, shape index: {}]   ;;  %s3371_s7 = inlined_call_operand.hbm [shape: f32[32,64], index: 7, kind: input, shape index: {}]   ;;  %s3372_s8 = inlined_call_operand.vmem [shape: f32[1,64], index: 8, kind: input, shape index: {}]   ;;  %s3373_s9 = inlined_call_operand.hbm [shape: f32[8,512], index: 9, kind: output, shape index: {}]  }
   0x1   :  { %15 = vsyncpa [#allocation7], 0 }
   0x2   :  { %16 = vsyncpa [#allocation10], 0 }
   0x3   :  { %17 = vsyncpa [#allocation13], 0 }
   0x4   :  { %18 = vsyncpa [#allocation5], 0  ;;  %s2882_s30 = smov [#allocation6]   ;;  %s2883_s11 = smov [#allocation9]  }
   0x5   :  { %s36_s10 = sshll.u32 %s2882_s30, 4  ;;  %s64_s12 = sshll.u32 %s2883_s11, 4  ;;  %s37_s10 = int_to_ptr.vmem [resolvable:$true] %s36_s10  ;;  %s65_s12 = int_to_ptr.vmem [resolvable:$true] %s64_s12 }
   0x6   :  { %s2740_s13 = scalar_lea.vmem %s37_s10, 256  ;;  %p2745_p1 = scmp.lt.s32.totalorder %s37_s10, %s37_s10 }
   0x7   :  { %p2741_p0 = scmp.ne.s32.totalorder %s37_s10, %s2740_s13  ;;  %p2746_p2 = scmp.lt.s32.totalorder %s2740_s13, %s2740_s13 }
   0x9   :  { %p2747_p3 = por %p2746_p2, %p2745_p1 }
   0xb   :  { %p2748_p4 = pnand %p2747_p3, %p2741_p0 }
   0xd   :  { %2751 = shalt.err (!%p2748_p4)
}
   0xe   :  { %s2884_s14 = smov 128   ;;  %s2885_s15 = smov 8  }
   0xf   :  { %42 = dma.hbm_to_vmem [thread:$0]  %s3365_s1, 256, %s37_s10, [#allocation7], %s2884_s14, %s2884_s14, %s2885_s15  }
  0x10   :  { %s2760_s18 = scalar_lea.vmem %s65_s12, 512  ;;  %p2765_p6 = scmp.lt.s32.totalorder %s65_s12, %s65_s12 }
  0x11   :  { %p2761_p5 = scmp.ne.s32.totalorder %s65_s12, %s2760_s18  ;;  %p2766_p7 = scmp.lt.s32.totalorder %s2760_s18, %s2760_s18 }
  0x13   :  { %p2767_p8 = por %p2766_p7, %p2765_p6 }
  0x15   :  { %p2768_p9 = pnand %p2767_p8, %p2761_p5 }
  0x17   :  { %2771 = shalt.err (!%p2768_p9)
}
  0x18   :  { %70 = dma.hbm_to_vmem [thread:$0]  %s3369_s5, 512, %s65_s12, [#allocation10], %s2884_s14, %s2884_s14, %s2885_s15  }
  0x19   :  { %s2886_s21 = smov [#allocation3]   ;;  %s2887_s23 = smov [#allocation8]  }
  0x1a   :  { %s24_s22 = sshll.u32 %s2886_s21, 4  ;;  %s48_s24 = sshll.u32 %s2887_s23, 4  ;;  %s25_s22 = int_to_ptr.vmem [resolvable:$true] %s24_s22  ;;  %s49_s24 = int_to_ptr.vmem [resolvable:$true] %s48_s24 }
  0x1b   :  { %s2780_s1 = scalar_lea.vmem %s25_s22, 1024  ;;  %p2785_p11 = scmp.lt.s32.totalorder %s25_s22, %s25_s22 }
  0x1c   :  { %p2781_p10 = scmp.ne.s32.totalorder %s25_s22, %s2780_s1  ;;  %p2786_p12 = scmp.lt.s32.totalorder %s2780_s1, %s2780_s1 }
  0x1e   :  { %p2787_p13 = por %p2786_p12, %p2785_p11 }
  0x20   :  { %p2788_p0 = pnand %p2787_p13, %p2781_p10 }
  0x22   :  { %2791 = shalt.err (!%p2788_p0)
}
  0x23   :  { %30 = dma.hbm_to_vmem [thread:$0]  %s3364_s0, 1024, %s25_s22, [#allocation4], %s2884_s14, %s2884_s14, %s2885_s15  }
  0x24   :  { %s2800_s5 = scalar_lea.vmem %s49_s24, 256  ;;  %p2805_p2 = scmp.lt.s32.totalorder %s49_s24, %s49_s24 }
  0x25   :  { %p2801_p1 = scmp.ne.s32.totalorder %s49_s24, %s2800_s5  ;;  %p2806_p3 = scmp.lt.s32.totalorder %s2800_s5, %s2800_s5 }
  0x27   :  { %p2807_p4 = por %p2806_p3, %p2805_p2 }
  0x29   :  { %p2808_p5 = pnand %p2807_p4, %p2801_p1 }
  0x2b   :  { %2811 = shalt.err (!%p2808_p5)
}
  0x2c   :  { %54 = dma.hbm_to_vmem [thread:$0]  %s3366_s2, 256, %s49_s24, [#allocation7], %s2884_s14, %s2884_s14, %s2885_s15  }
  0x2d   :  { %s2888_s29 = smov [#allocation11]   ;;  %s2889_s10 = smov [#allocation12]  }
  0x2e   :  { %s76_s30 = sshll.u32 %s2888_s29, 4  ;;  %s88_s11 = sshll.u32 %s2889_s10, 4  ;;  %s77_s30 = int_to_ptr.vmem [resolvable:$true] %s76_s30  ;;  %s89_s11 = int_to_ptr.vmem [resolvable:$true] %s88_s11 }
  0x2f   :  { %s2820_s0 = scalar_lea.vmem %s77_s30, 512  ;;  %p2825_p7 = scmp.lt.s32.totalorder %s77_s30, %s77_s30 }
  0x30   :  { %p2821_p6 = scmp.ne.s32.totalorder %s77_s30, %s2820_s0  ;;  %p2826_p8 = scmp.lt.s32.totalorder %s2820_s0, %s2820_s0 }
  0x32   :  { %p2827_p9 = por %p2826_p8, %p2825_p7 }
  0x34   :  { %p2828_p10 = pnand %p2827_p9, %p2821_p6 }
  0x36   :  { %2831 = shalt.err (!%p2828_p10)
}
  0x37   :  { %82 = dma.hbm_to_vmem [thread:$0]  %s3370_s6, 512, %s77_s30, [#allocation10], %s2884_s14, %s2884_s14, %s2885_s15  }
  0x38   :  { %s2840_s2 = scalar_lea.vmem %s89_s11, 512  ;;  %p2845_p12 = scmp.lt.s32.totalorder %s89_s11, %s89_s11 }
  0x39   :  { %p2841_p11 = scmp.ne.s32.totalorder %s89_s11, %s2840_s2  ;;  %p2846_p13 = scmp.lt.s32.totalorder %s2840_s2, %s2840_s2 }
  0x3b   :  { %p2847_p0 = por %p2846_p13, %p2845_p12 }
  0x3d   :  { %p2848_p1 = pnand %p2847_p0, %p2841_p11 }
  0x3f   :  { %2851 = shalt.err (!%p2848_p1)
}
  0x40   :  { %94 = dma.hbm_to_vmem [thread:$0]  %s3371_s7, 512, %s89_s11, [#allocation13], %s2884_s14, %s2884_s14, %s2885_s15  }
  0x41   :  { %2872 = dma.done.wait [#allocation4], 1024  }
  0x42   :  { %2873 = vsyncadd [#allocation4], 4294966272 }
  0x43   :  { %2874 = dma.done.wait [#allocation7], 512  }
  0x44   :  { %2875 = vsyncadd [#allocation7], 4294966784 }
  0x45   :  { %2876 = dma.done.wait [#allocation10], 1024  }
  0x46   :  { %2877 = vsyncadd [#allocation10], 4294966272 }
  0x47   :  { %2878 = dma.done.wait [#allocation13], 512  }
  0x48   :  { %2879 = vsyncadd [#allocation13], 4294966784  ;;  %v2890_v0 = vmov 0.0   ;;  %vm2891_vm0 = vmmov 0   ;;  %vm140_vm1 = vcmask 130048   ;;  %v132_v1 = vld [vmem:[#allocation6 + $0x8] sm:$0xff] }
  0x49   :  { %2390 = vmatprep.subr.mxu1 %v2890_v0  ;;  %2398 = vmatprep.mubr.msk.f32.mxu1 %vm2891_vm0, %v2890_v0  ;;  %v131_v2 = vld [vmem:[#allocation6] sm:$0xff]  ;;  %v2988_v4 = vld [vmem:[#allocation9 + $0x18] sm:$0xff]  ;;  %v2990_v5 = vld [vmem:[#allocation3 + $0x8] sm:$0xff]  ;;  %s2893_s14 = smov 32   ;;  %vm270_vm2 = vcmask 261120   ;;  %vm2166_vm3 = vcmask 523264  }
  0x4a   :  { %v2984_v3 = vld [vmem:[#allocation3] sm:$0xff]  ;;  %2363 = vmatprep.subr.mxu0 %v132_v1  ;;  %2391 = vmatpush3.msra.mxu1 %v2988_v4  ;;  %v2993_v6 = vld [vmem:[#allocation3 + $0x10] sm:$0xff]  ;;  %v3005_v8 = vld [vmem:[#allocation3 + $0x18] sm:$0xff] }
  0x4b   :  { %2367 = vmatprep.mubr.msk.f32.mxu0 %vm140_vm1, %v2984_v3  ;;  %2364 = vmatpush3.msra.mxu0 %v132_v1  ;;  %v2995_v7 = vld [vmem:[#allocation9 + $0x10] sm:$0xff]  ;;  %v3008_v9 = vld [vmem:[#allocation3 + $0x20] sm:$0xff]  ;;  %v3010_v10 = vld [vmem:[#allocation9 + $0x8] sm:$0xff] }
  0x4c   :  { %2365 = vmatprep.subr.mxu0 %v131_v2  ;;  %2392 = vmatprep.subr.mxu1 %v2890_v0  ;;  %v3018_v11 = vld [vmem:[#allocation9] sm:$0xff]  ;;  %v3022_v12 = vld [vmem:[#allocation3 + $0x28] sm:$0xff]  ;;  %v3025_v13 = vld [vmem:[#allocation3 + $0x30] sm:$0xff] }
  0x4d   :  { %2366 = vmatpush3.msra.mxu0 %v131_v2  ;;  %2393 = vmatpush3.msra.mxu1 %v2995_v7  ;;  %v3036_v14 = vld [vmem:[#allocation3 + $0x38] sm:$0xff]  ;;  %v2193_v15 = vld [vmem:[%s3367_s3] ss:$0 sm:$0xff]  ;;  %s2892_s3 = smov 64  }
  0x4e   :  { %2368 = vmatmul.mubr.msk.f32.vlgmr.msra.gmra.mxu0 %vm140_vm1, %v2990_v5  ;;  %2379 = vmatprep.subr.mxu0 %v2890_v0 }
  0x4f   :  { %2380 = vmatpush3.msra.mxu0 %v2988_v4  ;;  %2370 = vmatprep.mubr.msk.f32.mxu0 %vm140_vm1, %v2993_v6 }
  0x50   :  { %2381 = vmatprep.subr.mxu0 %v2890_v0  ;;  %2394 = vmatprep.subr.mxu1 %v2890_v0 }
  0x51   :  { %2382 = vmatpush3.msra.mxu0 %v2995_v7  ;;  %2395 = vmatpush3.msra.mxu1 %v3010_v10 }
  0x52   :  { %2371 = vmatmul.mubr.msk.f32.gmra.mxu0 %vm140_vm1, %v3005_v8  ;;  %2383 = vmatprep.subr.mxu0 %v2890_v0 }
  0x53   :  { %2373 = vmatprep.mubr.msk.f32.mxu0 %vm140_vm1, %v3008_v9  ;;  %2384 = vmatpush3.msra.mxu0 %v3010_v10 }
  0x54   :  { %2385 = vmatprep.subr.mxu0 %v2890_v0  ;;  %2396 = vmatprep.subr.mxu1 %v2890_v0 }
  0x55   :  { %2386 = vmatpush3.msra.mxu0 %v3018_v11  ;;  %2397 = vmatpush3.msra.mxu1 %v3018_v11 }
  0x56   :  { %2374 = vmatmul.mubr.msk.f32.gmra.mxu0 %vm140_vm1, %v3022_v12  ;;  %2401 = vmatprep.subr.mxu0 %v2890_v0 }
  0x57   :  { %2376 = vmatprep.mubr.msk.f32.mxu0 %vm140_vm1, %v3025_v13  ;;  %2412 = vmatprep.subr.mxu1 %v2890_v0 }
  0x5a   :  { %2377 = vmatmul.mubr.msk.f32.gmra.mxu0 %vm140_vm1, %v3036_v14 }
  0x5b   :  { %2387 = vmatprep.mubr.msk.f32.mxu0 %vm2891_vm0, %v2890_v0 }
  0x5e   :  { %2388 = vmatmul.mubr.f32.vlgmr.msra.gmra.mxu0 %v2890_v0 }
  0x5f   :  { %2402 = vmatpush3.msra.mxu0 %v2988_v4  ;;  %2409 = vmatprep.mubr.msk.f32.mxu0 %vm2891_vm0, %v2890_v0 }
  0x60   :  { %2403 = vmatprep.subr.mxu0 %v2890_v0 }
  0x61   :  { %2404 = vmatpush3.msra.mxu0 %v2995_v7 }
  0x62   :  { %2405 = vmatprep.subr.mxu0 %v2890_v0 }
  0x63   :  { %2406 = vmatpush3.msra.mxu0 %v3010_v10 }
  0x64   :  { %2407 = vmatprep.subr.mxu0 %v2890_v0 }
  0x65   :  { %2408 = vmatpush3.msra.mxu0 %v3018_v11 }
  0x66   :  { %2423 = vmatprep.subr.mxu0 %v2890_v0 }
 0x10e   :  { %v2369_v16 = vpop.f32.mrf.mxu0 }
 0x10f   :  { %v237_v17 = vadd.f32 %v2369_v16, %v2193_v15 }
 0x110   :  { %v231_v18 = vpop.f32.mrf.mxu0 }
 0x111   :  { %v232_v30 = vadd.f32 %v2193_v15, %v231_v18 }
 0x112   :  { %v2372_v19 = vpop.f32.mrf.mxu0 }
 0x113   :  { %v3057_v20 = vadd.f32 %v2372_v19, %v2193_v15 }
 0x114   :  { %v241_v21 = vpop.f32.mrf.mxu0 }
 0x115   :  { %v3059_v22 = vadd.f32 %v2193_v15, %v241_v21 }
 0x116   :  { %v2375_v23 = vpop.f32.mrf.mxu0 }
 0x117   :  { %v3061_v24 = vadd.f32 %v2375_v23, %v2193_v15 }
 0x118   :  { %v251_v25 = vpop.f32.mrf.mxu0 }
 0x119   :  { %v3063_v26 = vadd.f32 %v2193_v15, %v251_v25 }
 0x11a   :  { %v2378_v27 = vpop.f32.mrf.mxu0 }
 0x11b   :  { %v3065_v28 = vadd.f32 %v2378_v27, %v2193_v15 }
 0x11c   :  { %v261_v29 = vpop.f32.mrf.mxu0 }
 0x11d   :  { %v3067_v31 = vadd.f32 %v2193_v15, %v261_v29 }
 0x11e   :  { %v340_v32 = vpop.f32.mrf.mxu0 }
 0x11f   :  { %v344_v33 = vadd.f32 %v340_v32, %v232_v30 }
 0x120   :  { %v2389_v34 = vpop.f32.mrf.mxu0 }
 0x121   :  { %2604 = vtanh.f32 %v344_v33  ;;  %v2202_v36 = vmul.f32 -1.442695, %v344_v33 }
 0x123   :  { %2606 = vpow2.f32 %v2202_v36 }
 0x12e   :  { %v2605_v35 = vpop.eup %2604 }
 0x12f   :  { %354 = vrot.lane.b32.xlu0 %v2605_v35, %s2892_s3 }
 0x130   :  { %v2607_v37 = vpop.eup %2606 }
 0x131   :  { %v348_v38 = vadd.f32 1.0, %v2607_v37 }
 0x133   :  { %2608 = vrcp.f32 %v348_v38 }
 0x140   :  { %v2609_v39 = vpop.eup %2608 }
 0x141   :  { %v352_v42 = vmul.f32 0.0, %v2609_v39 }
 0x1a1   :  { %v355_v40 = vpop.permute.xlu0 %354 }
 0x1a2   :  { %v357_v41 = vmul.f32 %v2609_v39, %v355_v40 }
 0x1a4   :  { %359 = vrot.lane.b32.xlu0 %v357_v41, %s2893_s14 }
 0x216   :  { %v360_v43 = vpop.permute.xlu0 %359 }
 0x217   :  { %v362_v44 = vadd.f32 %v360_v43, %v352_v42 }
 0x219   :  { %2610 = vtanh.f32 %v362_v44 }
 0x226   :  { %v2611_v45 = vpop.eup %2610 }
 0x227   :  { %365 = vrot.lane.b32.xlu1 %v2611_v45, %s2892_s3 }
 0x299   :  { %v366_v46 = vpop.permute.xlu1 %365 }
 0x29a   :  { %v368_v47 = vmul.f32 %v2609_v39, %v366_v46 }
 0x29c   :  { %370 = vrot.lane.b32.xlu1 %v368_v47, %s2893_s14 }
 0x30e   :  { %v371_v48 = vpop.permute.xlu1 %370 }
 0x30f   :  { %2399 = vmatmul.mubr.msk.f32.vlgmr.msra.gmra.mxu1 %vm270_vm2, %v371_v48 }
 0x310   :  { %2413 = vmatpush3.msra.mxu1 %v2988_v4  ;;  %2420 = vmatprep.mubr.msk.f32.mxu1 %vm2891_vm0, %v2890_v0 }
 0x311   :  { %2414 = vmatprep.subr.mxu1 %v2890_v0 }
 0x312   :  { %2415 = vmatpush3.msra.mxu1 %v2995_v7 }
 0x313   :  { %2416 = vmatprep.subr.mxu1 %v2890_v0 }
 0x314   :  { %2417 = vmatpush3.msra.mxu1 %v3010_v10 }
 0x315   :  { %2418 = vmatprep.subr.mxu1 %v2890_v0 }
 0x316   :  { %2419 = vmatpush3.msra.mxu1 %v3018_v11 }
 0x317   :  { %2434 = vmatprep.subr.mxu1 %v2890_v0 }
 0x3cf   :  { %v440_v49 = vpop.f32.mrf.mxu1 }
 0x3d0   :  { %v444_v50 = vadd.f32 %v440_v49, %v237_v17 }
 0x3d1   :  { %v2400_v51 = vpop.f32.mrf.mxu1 }
 0x3d2   :  { %2612 = vtanh.f32 %v444_v50  ;;  %v2204_v53 = vmul.f32 -1.442695, %v444_v50 }
 0x3d4   :  { %2614 = vpow2.f32 %v2204_v53 }
 0x3df   :  { %v2613_v52 = vpop.eup %2612 }
 0x3e0   :  { %454 = vrot.lane.b32.xlu0 %v2613_v52, %s2892_s3 }
 0x3e1   :  { %v2615_v54 = vpop.eup %2614 }
 0x3e2   :  { %v448_v55 = vadd.f32 1.0, %v2615_v54 }
 0x3e4   :  { %2616 = vrcp.f32 %v448_v55 }
 0x3f1   :  { %v2617_v56 = vpop.eup %2616 }
 0x3f2   :  { %v452_v59 = vmul.f32 %v2617_v56, %v362_v44 }
 0x452   :  { %v455_v57 = vpop.permute.xlu0 %454 }
 0x453   :  { %v457_v58 = vmul.f32 %v2617_v56, %v455_v57 }
 0x455   :  { %459 = vrot.lane.b32.xlu1 %v457_v58, %s2893_s14 }
 0x4c7   :  { %v460_v60 = vpop.permute.xlu1 %459 }
 0x4c8   :  { %v462_v61 = vadd.f32 %v460_v60, %v452_v59 }
 0x4ca   :  { %2618 = vtanh.f32 %v462_v61 }
 0x4d7   :  { %v2619_v62 = vpop.eup %2618 }
 0x4d8   :  { %465 = vrot.lane.b32.xlu0 %v2619_v62, %s2892_s3 }
 0x54a   :  { %v466_v63 = vpop.permute.xlu0 %465 }
 0x54b   :  { %v468_v1 = vmul.f32 %v2617_v56, %v466_v63 }
 0x54d   :  { %470 = vrot.lane.b32.xlu1 %v468_v1, %s2893_s14 }
 0x5bf   :  { %v471_v2 = vpop.permute.xlu1 %470 }
 0x5c0   :  { %2410 = vmatmul.mubr.msk.f32.vlgmr.msra.gmra.mxu0 %vm270_vm2, %v471_v2 }
 0x5c1   :  { %2424 = vmatpush3.msra.mxu0 %v2988_v4  ;;  %2431 = vmatprep.mubr.msk.f32.mxu0 %vm2891_vm0, %v2890_v0 }
 0x5c2   :  { %2425 = vmatprep.subr.mxu0 %v2890_v0 }
 0x5c3   :  { %2426 = vmatpush3.msra.mxu0 %v2995_v7 }
 0x5c4   :  { %2427 = vmatprep.subr.mxu0 %v2890_v0 }
 0x5c5   :  { %2428 = vmatpush3.msra.mxu0 %v3010_v10 }
 0x5c6   :  { %2429 = vmatprep.subr.mxu0 %v2890_v0 }
 0x5c7   :  { %2430 = vmatpush3.msra.mxu0 %v3018_v11 }
 0x5c8   :  { %2445 = vmatprep.subr.mxu0 %v2890_v0 }
 0x680   :  { %v540_v15 = vpop.f32.mrf.mxu0 }
 0x681   :  { %v544_v16 = vadd.f32 %v540_v15, %v3059_v22 }
 0x682   :  { %v2411_v17 = vpop.f32.mrf.mxu0 }
 0x683   :  { %2620 = vtanh.f32 %v544_v16  ;;  %v2206_v19 = vmul.f32 -1.442695, %v544_v16 }
 0x685   :  { %2622 = vpow2.f32 %v2206_v19 }
 0x690   :  { %v2621_v18 = vpop.eup %2620 }
 0x691   :  { %554 = vrot.lane.b32.xlu0 %v2621_v18, %s2892_s3 }
 0x692   :  { %v2623_v21 = vpop.eup %2622 }
 0x693   :  { %v548_v23 = vadd.f32 1.0, %v2623_v21 }
 0x695   :  { %2624 = vrcp.f32 %v548_v23 }
 0x6a2   :  { %v2625_v25 = vpop.eup %2624 }
 0x6a3   :  { %v552_v30 = vmul.f32 %v2625_v25, %v462_v61 }
 0x703   :  { %v555_v27 = vpop.permute.xlu0 %554 }
 0x704   :  { %v557_v29 = vmul.f32 %v2625_v25, %v555_v27 }
 0x706   :  { %559 = vrot.lane.b32.xlu1 %v557_v29, %s2893_s14 }
 0x778   :  { %v560_v32 = vpop.permute.xlu1 %559 }
 0x779   :  { %v562_v33 = vadd.f32 %v560_v32, %v552_v30 }
 0x77b   :  { %2626 = vtanh.f32 %v562_v33 }
 0x788   :  { %v2627_v22 = vpop.eup %2626 }
 0x789   :  { %565 = vrot.lane.b32.xlu0 %v2627_v22, %s2892_s3 }
 0x7fb   :  { %v566_v34 = vpop.permute.xlu0 %565 }
 0x7fc   :  { %v568_v35 = vmul.f32 %v2625_v25, %v566_v34 }
 0x7fe   :  { %570 = vrot.lane.b32.xlu1 %v568_v35, %s2893_s14 }
 0x870   :  { %v571_v36 = vpop.permute.xlu1 %570 }
 0x871   :  { %2421 = vmatmul.mubr.msk.f32.vlgmr.msra.gmra.mxu1 %vm270_vm2, %v571_v36 }
 0x872   :  { %2435 = vmatpush3.msra.mxu1 %v2988_v4  ;;  %2442 = vmatprep.mubr.msk.f32.mxu1 %vm2891_vm0, %v2890_v0 }
 0x873   :  { %2436 = vmatprep.subr.mxu1 %v2890_v0 }
 0x874   :  { %2437 = vmatpush3.msra.mxu1 %v2995_v7 }
 0x875   :  { %2438 = vmatprep.subr.mxu1 %v2890_v0 }
 0x876   :  { %2439 = vmatpush3.msra.mxu1 %v3010_v10 }
 0x877   :  { %2440 = vmatprep.subr.mxu1 %v2890_v0 }
 0x878   :  { %2441 = vmatpush3.msra.mxu1 %v3018_v11 }
 0x879   :  { %2456 = vmatprep.subr.mxu1 %v2890_v0 }
 0x931   :  { %v640_v37 = vpop.f32.mrf.mxu1 }
 0x932   :  { %v644_v38 = vadd.f32 %v640_v37, %v3057_v20 }
 0x933   :  { %v2422_v39 = vpop.f32.mrf.mxu1 }
 0x934   :  { %2628 = vtanh.f32 %v644_v38  ;;  %v2208_v41 = vmul.f32 -1.442695, %v644_v38 }
 0x936   :  { %2630 = vpow2.f32 %v2208_v41 }
 0x941   :  { %v2629_v40 = vpop.eup %2628 }
 0x942   :  { %654 = vrot.lane.b32.xlu0 %v2629_v40, %s2892_s3 }
 0x943   :  { %v2631_v42 = vpop.eup %2630 }
 0x944   :  { %v648_v43 = vadd.f32 1.0, %v2631_v42 }
 0x946   :  { %2632 = vrcp.f32 %v648_v43 }
 0x953   :  { %v2633_v44 = vpop.eup %2632 }
 0x954   :  { %v652_v47 = vmul.f32 %v2633_v44, %v562_v33 }
 0x9b4   :  { %v655_v45 = vpop.permute.xlu0 %654 }
 0x9b5   :  { %v657_v46 = vmul.f32 %v2633_v44, %v655_v45 }
 0x9b7   :  { %659 = vrot.lane.b32.xlu1 %v657_v46, %s2893_s14 }
 0xa29   :  { %v660_v48 = vpop.permute.xlu1 %659 }
 0xa2a   :  { %v662_v49 = vadd.f32 %v660_v48, %v652_v47 }
 0xa2c   :  { %2634 = vtanh.f32 %v662_v49 }
 0xa39   :  { %v2635_v20 = vpop.eup %2634 }
 0xa3a   :  { %665 = vrot.lane.b32.xlu0 %v2635_v20, %s2892_s3 }
 0xaac   :  { %v666_v50 = vpop.permute.xlu0 %665 }
 0xaad   :  { %v668_v51 = vmul.f32 %v2633_v44, %v666_v50 }
 0xaaf   :  { %670 = vrot.lane.b32.xlu1 %v668_v51, %s2893_s14 }
 0xb21   :  { %v671_v52 = vpop.permute.xlu1 %670 }
 0xb22   :  { %2432 = vmatmul.mubr.msk.f32.vlgmr.msra.gmra.mxu0 %vm270_vm2, %v671_v52 }
 0xb23   :  { %2446 = vmatpush3.msra.mxu0 %v2988_v4  ;;  %2453 = vmatprep.mubr.msk.f32.mxu0 %vm2891_vm0, %v2890_v0 }
 0xb24   :  { %2447 = vmatprep.subr.mxu0 %v2890_v0 }
 0xb25   :  { %2448 = vmatpush3.msra.mxu0 %v2995_v7 }
 0xb26   :  { %2449 = vmatprep.subr.mxu0 %v2890_v0 }
 0xb27   :  { %2450 = vmatpush3.msra.mxu0 %v3010_v10 }
 0xb28   :  { %2451 = vmatprep.subr.mxu0 %v2890_v0 }
 0xb29   :  { %2452 = vmatpush3.msra.mxu0 %v3018_v11 }
 0xbe2   :  { %v740_v53 = vpop.f32.mrf.mxu0 }
 0xbe3   :  { %v744_v54 = vadd.f32 %v740_v53, %v3063_v26 }
 0xbe4   :  { %v2433_v55 = vpop.f32.mrf.mxu0 }
 0xbe5   :  { %2636 = vtanh.f32 %v744_v54  ;;  %v2210_v57 = vmul.f32 -1.442695, %v744_v54 }
 0xbe7   :  { %2638 = vpow2.f32 %v2210_v57 }
 0xbf2   :  { %v2637_v56 = vpop.eup %2636 }
 0xbf3   :  { %754 = vrot.lane.b32.xlu0 %v2637_v56, %s2892_s3 }
 0xbf4   :  { %v2639_v58 = vpop.eup %2638 }
 0xbf5   :  { %v748_v59 = vadd.f32 1.0, %v2639_v58 }
 0xbf7   :  { %2640 = vrcp.f32 %v748_v59 }
 0xc04   :  { %v2641_v60 = vpop.eup %2640 }
 0xc05   :  { %v752_v63 = vmul.f32 %v2641_v60, %v662_v49 }
 0xc65   :  { %v755_v61 = vpop.permute.xlu0 %754 }
 0xc66   :  { %v757_v62 = vmul.f32 %v2641_v60, %v755_v61 }
 0xc68   :  { %759 = vrot.lane.b32.xlu1 %v757_v62, %s2893_s14  ;;  %v1069_v62 = vld [vmem:[#allocation8] sm:$0xff] }
 0xcda   :  { %v760_v1 = vpop.permute.xlu1 %759 }
 0xcdb   :  { %v762_v2 = vadd.f32 %v760_v1, %v752_v63  ;;  %v3165_v63 = vld [vmem:[#allocation11 + $0x18] sm:$0xff]  ;;  %v3168_v1 = vld [vmem:[#allocation11 + $0x10] sm:$0xff] }
 0xcdd   :  { %2642 = vtanh.f32 %v762_v2 }
 0xcea   :  { %v2643_v26 = vpop.eup %2642 }
 0xceb   :  { %765 = vrot.lane.b32.xlu0 %v2643_v26, %s2892_s3  ;;  %v3175_v26 = vld [vmem:[#allocation11] sm:$0xff] }
 0xd5d   :  { %v766_v15 = vpop.permute.xlu0 %765 }
 0xd5e   :  { %v768_v16 = vmul.f32 %v2641_v60, %v766_v15 }
 0xd60   :  { %770 = vrot.lane.b32.xlu1 %v768_v16, %s2893_s14 }
 0xdd2   :  { %v771_v17 = vpop.permute.xlu1 %770 }
 0xdd3   :  { %2443 = vmatmul.mubr.msk.f32.vlgmr.msra.gmra.mxu1 %vm270_vm2, %v771_v17 }
 0xdd4   :  { %2457 = vmatpush3.msra.mxu1 %v2988_v4  ;;  %2464 = vmatprep.mubr.msk.f32.mxu1 %vm2891_vm0, %v2890_v0 }
 0xdd5   :  { %2458 = vmatprep.subr.mxu1 %v2890_v0 }
 0xdd6   :  { %2459 = vmatpush3.msra.mxu1 %v2995_v7 }
 0xdd7   :  { %2460 = vmatprep.subr.mxu1 %v2890_v0 }
 0xdd8   :  { %2461 = vmatpush3.msra.mxu1 %v3010_v10 }
 0xdd9   :  { %2462 = vmatprep.subr.mxu1 %v2890_v0 }
 0xdda   :  { %2463 = vmatpush3.msra.mxu1 %v3018_v11 }
 0xddb   :  { %2483 = vmatprep.subr.mxu1 %v2890_v0 }
 0xe93   :  { %v840_v18 = vpop.f32.mrf.mxu1 }
 0xe94   :  { %v844_v4 = vadd.f32 %v840_v18, %v3061_v24 }
 0xe95   :  { %v2444_v19 = vpop.f32.mrf.mxu1 }
 0xe96   :  { %2644 = vtanh.f32 %v844_v4  ;;  %v2212_v23 = vmul.f32 -1.442695, %v844_v4 }
 0xe98   :  { %2646 = vpow2.f32 %v2212_v23 }
 0xea3   :  { %v2645_v21 = vpop.eup %2644 }
 0xea4   :  { %854 = vrot.lane.b32.xlu0 %v2645_v21, %s2892_s3 }
 0xea5   :  { %v2647_v7 = vpop.eup %2646 }
 0xea6   :  { %v848_v25 = vadd.f32 1.0, %v2647_v7 }
 0xea8   :  { %2648 = vrcp.f32 %v848_v25 }
 0xeb5   :  { %v2649_v10 = vpop.eup %2648 }
 0xeb6   :  { %v852_v11 = vmul.f32 %v2649_v10, %v762_v2  ;;  %v3171_v2 = vld [vmem:[#allocation11 + $0x8] sm:$0xff] }
 0xf16   :  { %v855_v27 = vpop.permute.xlu0 %854 }
 0xf17   :  { %v857_v29 = vmul.f32 %v2649_v10, %v855_v27 }
 0xf19   :  { %859 = vrot.lane.b32.xlu1 %v857_v29, %s2893_s14 }
 0xf8b   :  { %v860_v30 = vpop.permute.xlu1 %859 }
 0xf8c   :  { %v862_v32 = vadd.f32 %v860_v30, %v852_v11 }
 0xf8e   :  { %2650 = vtanh.f32 %v862_v32 }
 0xf9b   :  { %v2651_v24 = vpop.eup %2650 }
 0xf9c   :  { %865 = vrot.lane.b32.xlu0 %v2651_v24, %s2892_s3 }
0x100e   :  { %v866_v33 = vpop.permute.xlu0 %865 }
0x100f   :  { %v868_v22 = vmul.f32 %v2649_v10, %v866_v33 }
0x1011   :  { %870 = vrot.lane.b32.xlu1 %v868_v22, %s2893_s14 }
0x1083   :  { %v871_v34 = vpop.permute.xlu1 %870 }
0x1084   :  { %2454 = vmatmul.mubr.msk.f32.vlgmr.msra.gmra.mxu0 %vm270_vm2, %v871_v34 }
0x1085   :  { %2471 = vmatprep.mubr.msk.f32.mxu0 %vm140_vm1, %v2984_v3 }
0x1144   :  { %v940_v35 = vpop.f32.mrf.mxu0 }
0x1145   :  { %v944_v36 = vadd.f32 %v940_v35, %v3067_v31 }
0x1146   :  { %v2455_v37 = vpop.f32.mrf.mxu0 }
0x1147   :  { %2652 = vtanh.f32 %v944_v36  ;;  %v2214_v39 = vmul.f32 -1.442695, %v944_v36 }
0x1149   :  { %2654 = vpow2.f32 %v2214_v39 }
0x1154   :  { %v2653_v38 = vpop.eup %2652 }
0x1155   :  { %954 = vrot.lane.b32.xlu0 %v2653_v38, %s2892_s3 }
0x1156   :  { %v2655_v40 = vpop.eup %2654 }
0x1157   :  { %v948_v41 = vadd.f32 1.0, %v2655_v40 }
0x1159   :  { %2656 = vrcp.f32 %v948_v41 }
0x1166   :  { %v2657_v42 = vpop.eup %2656 }
0x1167   :  { %v952_v45 = vmul.f32 %v2657_v42, %v862_v32 }
0x11c7   :  { %v955_v43 = vpop.permute.xlu0 %954 }
0x11c8   :  { %v957_v44 = vmul.f32 %v2657_v42, %v955_v43 }
0x11ca   :  { %959 = vrot.lane.b32.xlu1 %v957_v44, %s2893_s14 }
0x123c   :  { %v960_v3 = vpop.permute.xlu1 %959 }
0x123d   :  { %v962_v46 = vadd.f32 %v960_v3, %v952_v45 }
0x123f   :  { %2658 = vtanh.f32 %v962_v46 }
0x124c   :  { %v2659_v31 = vpop.eup %2658 }
0x124d   :  { %965 = vrot.lane.b32.xlu0 %v2659_v31, %s2892_s3 }
0x12bf   :  { %v966_v47 = vpop.permute.xlu0 %965 }
0x12c0   :  { %v968_v48 = vmul.f32 %v2657_v42, %v966_v47 }
0x12c2   :  { %970 = vrot.lane.b32.xlu1 %v968_v48, %s2893_s14 }
0x1334   :  { %v971_v49 = vpop.permute.xlu1 %970 }
0x1335   :  { %2465 = vmatmul.mubr.msk.f32.vlgmr.msra.gmra.mxu1 %vm270_vm2, %v971_v49 }
0x1336   :  { %2491 = vmatprep.mubr.msk.f32.mxu1 %vm2891_vm0, %v2890_v0  ;;  %2484 = vmatpush3.msra.mxu1 %v3165_v63 }
0x1337   :  { %2485 = vmatprep.subr.mxu1 %v2890_v0 }
0x1338   :  { %2486 = vmatpush3.msra.mxu1 %v3168_v1 }
0x1339   :  { %2487 = vmatprep.subr.mxu1 %v2890_v0 }
0x133a   :  { %2488 = vmatpush3.msra.mxu1 %v3171_v2 }
0x133b   :  { %2489 = vmatprep.subr.mxu1 %v2890_v0 }
0x133c   :  { %2490 = vmatpush3.msra.mxu1 %v3175_v26 }
0x133d   :  { %2505 = vmatprep.subr.mxu1 %v2890_v0 }
0x13f5   :  { %v1040_v20 = vpop.f32.mrf.mxu1 }
0x13f6   :  { %v1044_v50 = vadd.f32 %v1040_v20, %v3065_v28  ;;  %v1070_v28 = vld [vmem:[#allocation8 + $0x8] sm:$0xff] }
0x13f7   :  { %v2466_v51 = vpop.f32.mrf.mxu1  ;;  %2467 = vmatprep.subr.mxu0 %v1070_v28 }
0x13f8   :  { %2660 = vtanh.f32 %v1044_v50  ;;  %v2216_v53 = vmul.f32 -1.442695, %v1044_v50  ;;  %2468 = vmatpush3.msra.mxu0 %v1070_v28 }
0x13f9   :  { %2469 = vmatprep.subr.mxu0 %v1069_v62 }
0x13fa   :  { %2662 = vpow2.f32 %v2216_v53  ;;  %2470 = vmatpush3.msra.mxu0 %v1069_v62 }
0x13fb   :  { %2472 = vmatmul.mubr.msk.f32.vlgmr.msra.gmra.mxu0 %vm140_vm1, %v2990_v5  ;;  %2494 = vmatprep.subr.mxu0 %v2890_v0 }
0x13fc   :  { %2495 = vmatpush3.msra.mxu0 %v3165_v63  ;;  %2474 = vmatprep.mubr.msk.f32.mxu0 %vm140_vm1, %v2993_v6 }
0x13fd   :  { %2496 = vmatprep.subr.mxu0 %v2890_v0 }
0x13fe   :  { %2497 = vmatpush3.msra.mxu0 %v3168_v1 }
0x13ff   :  { %2475 = vmatmul.mubr.msk.f32.gmra.mxu0 %vm140_vm1, %v3005_v8  ;;  %2498 = vmatprep.subr.mxu0 %v2890_v0 }
0x1400   :  { %2477 = vmatprep.mubr.msk.f32.mxu0 %vm140_vm1, %v3008_v9  ;;  %2499 = vmatpush3.msra.mxu0 %v3171_v2 }
0x1401   :  { %2500 = vmatprep.subr.mxu0 %v2890_v0 }
0x1402   :  { %2501 = vmatpush3.msra.mxu0 %v3175_v26 }
0x1403   :  { %2478 = vmatmul.mubr.msk.f32.gmra.mxu0 %vm140_vm1, %v3022_v12  ;;  %2516 = vmatprep.subr.mxu0 %v2890_v0 }
0x1404   :  { %2480 = vmatprep.mubr.msk.f32.mxu0 %vm140_vm1, %v3025_v13  ;;  %v3222_v13 = vld [vmem:[%s3368_s4] ss:$0 sm:$0xff] }
0x1405   :  { %v2661_v52 = vpop.eup %2660 }
0x1406   :  { %1054 = vrot.lane.b32.xlu0 %v2661_v52, %s2892_s3 }
0x1407   :  { %v2663_v54 = vpop.eup %2662  ;;  %2481 = vmatmul.mubr.msk.f32.gmra.mxu0 %vm140_vm1, %v3036_v14 }
0x1408   :  { %v1048_v55 = vadd.f32 1.0, %v2663_v54  ;;  %2502 = vmatprep.mubr.msk.f32.mxu0 %vm2891_vm0, %v2890_v0 }
0x140a   :  { %2664 = vrcp.f32 %v1048_v55 }
0x1417   :  { %v2665_v56 = vpop.eup %2664 }
0x1418   :  { %v1052_v59 = vmul.f32 %v2665_v56, %v962_v46 }
0x1478   :  { %v1055_v57 = vpop.permute.xlu0 %1054 }
0x1479   :  { %v1057_v58 = vmul.f32 %v2665_v56, %v1055_v57 }
0x147b   :  { %1059 = vrot.lane.b32.xlu1 %v1057_v58, %s2893_s14 }
0x14bb   :  { %v2473_v12 = vpop.f32.mrf.mxu0 }
0x14bc   :  { %v1150_v39 = vadd.f32 %v2473_v12, %v3222_v13 }
0x14bd   :  { %v1144_v14 = vpop.f32.mrf.mxu0 }
0x14be   :  { %v1145_v15 = vadd.f32 %v3222_v13, %v1144_v14 }
0x14bf   :  { %v3241_v22 = vpop.f32.mrf.mxu0 }
0x14c1   :  { %v1154_v34 = vpop.f32.mrf.mxu0 }
0x14c2   :  { %v1155_v54 = vadd.f32 %v3222_v13, %v1154_v34 }
0x14c3   :  { %v3243_v35 = vpop.f32.mrf.mxu0 }
0x14c5   :  { %v3245_v36 = vpop.f32.mrf.mxu0 }
0x14c7   :  { %v3247_v37 = vpop.f32.mrf.mxu0 }
0x14c9   :  { %v3249_v38 = vpop.f32.mrf.mxu0 }
0x14ed   :  { %v1060_v60 = vpop.permute.xlu1 %1059 }
0x14ee   :  { %v1062_v61 = vadd.f32 %v1060_v60, %v1052_v59 }
0x14f0   :  { %2666 = vtanh.f32 %v1062_v61 }
0x14fd   :  { %v2667_v5 = vpop.eup %2666 }
0x14fe   :  { %1065 = vrot.lane.b32.xlu0 %v2667_v5, %s2892_s3 }
0x1570   :  { %v1066_v6 = vpop.permute.xlu0 %1065 }
0x1571   :  { %v1068_v8 = vmul.f32 %v2665_v56, %v1066_v6 }
0x1573   :  { %1184 = vrot.lane.b32.xlu1 %v1068_v8, %s2893_s14 }
0x15e5   :  { %v1185_v9 = vpop.permute.xlu1 %1184 }
0x15e6   :  { %2492 = vmatmul.mubr.msk.f32.vlgmr.msra.gmra.mxu1 %vm270_vm2, %v1185_v9 }
0x15e7   :  { %2506 = vmatpush3.msra.mxu1 %v3165_v63  ;;  %2513 = vmatprep.mubr.msk.f32.mxu1 %vm2891_vm0, %v2890_v0 }
0x15e8   :  { %2507 = vmatprep.subr.mxu1 %v2890_v0 }
0x15e9   :  { %2508 = vmatpush3.msra.mxu1 %v3168_v1 }
0x15ea   :  { %2509 = vmatprep.subr.mxu1 %v2890_v0 }
0x15eb   :  { %2510 = vmatpush3.msra.mxu1 %v3171_v2 }
0x15ec   :  { %2511 = vmatprep.subr.mxu1 %v2890_v0 }
0x15ed   :  { %2512 = vmatpush3.msra.mxu1 %v3175_v26 }
0x15ee   :  { %2527 = vmatprep.subr.mxu1 %v2890_v0 }
0x16a6   :  { %v1254_v16 = vpop.f32.mrf.mxu1 }
0x16a7   :  { %v1258_v17 = vadd.f32 %v1254_v16, %v1145_v15 }
0x16a8   :  { %v2493_v18 = vpop.f32.mrf.mxu1 }
0x16a9   :  { %2668 = vtanh.f32 %v1258_v17  ;;  %v2227_v19 = vmul.f32 -1.442695, %v1258_v17  ;;  %v1160_v17 = vadd.f32 %v3241_v22, %v3222_v13 }
0x16ab   :  { %2670 = vpow2.f32 %v2227_v19 }
0x16b6   :  { %v2669_v4 = vpop.eup %2668 }
0x16b7   :  { %1268 = vrot.lane.b32.xlu0 %v2669_v4, %s2892_s3 }
0x16b8   :  { %v2671_v21 = vpop.eup %2670 }
0x16b9   :  { %v1262_v23 = vadd.f32 1.0, %v2671_v21 }
0x16bb   :  { %2672 = vrcp.f32 %v1262_v23 }
0x16c8   :  { %v2673_v7 = vpop.eup %2672 }
0x16c9   :  { %v1266_v27 = vmul.f32 0.0, %v2673_v7 }
0x1729   :  { %v1269_v25 = vpop.permute.xlu0 %1268 }
0x172a   :  { %v1271_v10 = vmul.f32 %v2673_v7, %v1269_v25 }
0x172c   :  { %1273 = vrot.lane.b32.xlu1 %v1271_v10, %s2893_s14 }
0x179e   :  { %v1274_v29 = vpop.permute.xlu1 %1273 }
0x179f   :  { %v1276_v11 = vadd.f32 %v1274_v29, %v1266_v27 }
0x17a1   :  { %2674 = vtanh.f32 %v1276_v11 }
0x17ae   :  { %v2675_v30 = vpop.eup %2674 }
0x17af   :  { %1279 = vrot.lane.b32.xlu0 %v2675_v30, %s2892_s3 }
0x1821   :  { %v1280_v32 = vpop.permute.xlu0 %1279 }
0x1822   :  { %v1282_v24 = vmul.f32 %v2673_v7, %v1280_v32 }
0x1824   :  { %1284 = vrot.lane.b32.xlu1 %v1282_v24, %s2893_s14 }
0x1896   :  { %v1285_v33 = vpop.permute.xlu1 %1284 }
0x1897   :  { %1287 = vst.msk [vmem:[#allocation2] sm:$0xff] %vm270_vm2, %v1285_v33  ;;  %2503 = vmatmul.mubr.msk.f32.vlgmr.msra.gmra.mxu0 %vm270_vm2, %v1285_v33 }
0x1898   :  { %2517 = vmatpush3.msra.mxu0 %v3165_v63  ;;  %2524 = vmatprep.mubr.msk.f32.mxu0 %vm2891_vm0, %v2890_v0 }
0x1899   :  { %2518 = vmatprep.subr.mxu0 %v2890_v0 }
0x189a   :  { %2519 = vmatpush3.msra.mxu0 %v3168_v1 }
0x189b   :  { %2520 = vmatprep.subr.mxu0 %v2890_v0 }
0x189c   :  { %2521 = vmatpush3.msra.mxu0 %v3171_v2 }
0x189d   :  { %2522 = vmatprep.subr.mxu0 %v2890_v0 }
0x189e   :  { %2523 = vmatpush3.msra.mxu0 %v3175_v26 }
0x189f   :  { %2538 = vmatprep.subr.mxu0 %v2890_v0 }
0x1957   :  { %v1356_v40 = vpop.f32.mrf.mxu0 }
0x1958   :  { %v1360_v41 = vadd.f32 %v1356_v40, %v1150_v39  ;;  %v1165_v39 = vadd.f32 %v3222_v13, %v3245_v36 }
0x1959   :  { %v2504_v42 = vpop.f32.mrf.mxu0 }
0x195a   :  { %2676 = vtanh.f32 %v1360_v41  ;;  %v2229_v44 = vmul.f32 -1.442695, %v1360_v41 }
0x195c   :  { %2678 = vpow2.f32 %v2229_v44 }
0x1967   :  { %v2677_v43 = vpop.eup %2676 }
0x1968   :  { %1370 = vrot.lane.b32.xlu0 %v2677_v43, %s2892_s3 }
0x1969   :  { %v2679_v45 = vpop.eup %2678 }
0x196a   :  { %v1364_v3 = vadd.f32 1.0, %v2679_v45 }
0x196c   :  { %2680 = vrcp.f32 %v1364_v3 }
0x1979   :  { %v2681_v46 = vpop.eup %2680 }
0x197a   :  { %v1368_v48 = vmul.f32 %v2681_v46, %v1276_v11 }
0x19da   :  { %v1371_v31 = vpop.permute.xlu0 %1370 }
0x19db   :  { %v1373_v47 = vmul.f32 %v2681_v46, %v1371_v31 }
0x19dd   :  { %1375 = vrot.lane.b32.xlu1 %v1373_v47, %s2893_s14 }
0x1a4f   :  { %v1376_v49 = vpop.permute.xlu1 %1375 }
0x1a50   :  { %v1378_v20 = vadd.f32 %v1376_v49, %v1368_v48 }
0x1a52   :  { %2682 = vtanh.f32 %v1378_v20 }
0x1a5f   :  { %v2683_v50 = vpop.eup %2682 }
0x1a60   :  { %1381 = vrot.lane.b32.xlu0 %v2683_v50, %s2892_s3 }
0x1ad2   :  { %v1382_v51 = vpop.permute.xlu0 %1381 }
0x1ad3   :  { %v1384_v52 = vmul.f32 %v2681_v46, %v1382_v51 }
0x1ad5   :  { %1386 = vrot.lane.b32.xlu1 %v1384_v52, %s2893_s14 }
0x1b47   :  { %v1387_v53 = vpop.permute.xlu1 %1386 }
0x1b48   :  { %1389 = vst.msk [vmem:[#allocation2 + $0x8] sm:$0xff] %vm270_vm2, %v1387_v53  ;;  %2514 = vmatmul.mubr.msk.f32.vlgmr.msra.gmra.mxu1 %vm270_vm2, %v1387_v53  ;;  %v1170_v53 = vadd.f32 %v3243_v35, %v3222_v13 }
0x1b49   :  { %2528 = vmatpush3.msra.mxu1 %v3165_v63  ;;  %2535 = vmatprep.mubr.msk.f32.mxu1 %vm2891_vm0, %v2890_v0 }
0x1b4a   :  { %2529 = vmatprep.subr.mxu1 %v2890_v0 }
0x1b4b   :  { %2530 = vmatpush3.msra.mxu1 %v3168_v1 }
0x1b4c   :  { %2531 = vmatprep.subr.mxu1 %v2890_v0 }
0x1b4d   :  { %2532 = vmatpush3.msra.mxu1 %v3171_v2 }
0x1b4e   :  { %2533 = vmatprep.subr.mxu1 %v2890_v0 }
0x1b4f   :  { %2534 = vmatpush3.msra.mxu1 %v3175_v26 }
0x1b50   :  { %2549 = vmatprep.subr.mxu1 %v2890_v0 }
0x1c08   :  { %v1458_v55 = vpop.f32.mrf.mxu1 }
0x1c09   :  { %v1462_v56 = vadd.f32 %v1458_v55, %v1155_v54 }
0x1c0a   :  { %v2515_v57 = vpop.f32.mrf.mxu1 }
0x1c0b   :  { %2684 = vtanh.f32 %v1462_v56  ;;  %v2231_v59 = vmul.f32 -1.442695, %v1462_v56 }
0x1c0d   :  { %2686 = vpow2.f32 %v2231_v59 }
0x1c18   :  { %v2685_v58 = vpop.eup %2684 }
0x1c19   :  { %1472 = vrot.lane.b32.xlu0 %v2685_v58, %s2892_s3 }
0x1c1a   :  { %v2687_v60 = vpop.eup %2686 }
0x1c1b   :  { %v1466_v61 = vadd.f32 1.0, %v2687_v60 }
0x1c1d   :  { %2688 = vrcp.f32 %v1466_v61  ;;  %v2013_v61 = vld [vmem:[#allocation12 + $0x18] sm:$0xff] }
0x1c2a   :  { %v2689_v28 = vpop.eup %2688 }
0x1c2b   :  { %v1470_v6 = vmul.f32 %v2689_v28, %v1378_v20 }
0x1c8b   :  { %v1473_v62 = vpop.permute.xlu0 %1472 }
0x1c8c   :  { %v1475_v5 = vmul.f32 %v2689_v28, %v1473_v62 }
0x1c8e   :  { %1477 = vrot.lane.b32.xlu1 %v1475_v5, %s2893_s14 }
0x1d00   :  { %v1478_v8 = vpop.permute.xlu1 %1477 }
0x1d01   :  { %v1480_v9 = vadd.f32 %v1478_v8, %v1470_v6  ;;  %v2012_v8 = vld [vmem:[#allocation12 + $0x10] sm:$0xff] }
0x1d03   :  { %2690 = vtanh.f32 %v1480_v9 }
0x1d10   :  { %v2691_v12 = vpop.eup %2690 }
0x1d11   :  { %1483 = vrot.lane.b32.xlu0 %v2691_v12, %s2892_s3  ;;  %v2011_v12 = vld [vmem:[#allocation12 + $0x8] sm:$0xff] }
0x1d83   :  { %v1484_v14 = vpop.permute.xlu0 %1483 }
0x1d84   :  { %v1486_v15 = vmul.f32 %v2689_v28, %v1484_v14  ;;  %v2010_v14 = vld [vmem:[#allocation12] sm:$0xff] }
0x1d86   :  { %1488 = vrot.lane.b32.xlu1 %v1486_v15, %s2893_s14  ;;  %v2003_v15 = vld [vmem:[#allocation2 + $0x8] sm:$0xff] }
0x1df8   :  { %v1489_v16 = vpop.permute.xlu1 %1488 }
0x1df9   :  { %1491 = vst.msk [vmem:[#allocation2 + $0x10] sm:$0xff] %vm270_vm2, %v1489_v16  ;;  %2525 = vmatmul.mubr.msk.f32.vlgmr.msra.gmra.mxu0 %vm270_vm2, %v1489_v16 }
0x1dfa   :  { %2539 = vmatpush3.msra.mxu0 %v3165_v63  ;;  %2546 = vmatprep.mubr.msk.f32.mxu0 %vm2891_vm0, %v2890_v0 }
0x1dfb   :  { %2540 = vmatprep.subr.mxu0 %v2890_v0 }
0x1dfc   :  { %2541 = vmatpush3.msra.mxu0 %v3168_v1 }
0x1dfd   :  { %2542 = vmatprep.subr.mxu0 %v2890_v0 }
0x1dfe   :  { %2543 = vmatpush3.msra.mxu0 %v3171_v2 }
0x1dff   :  { %2544 = vmatprep.subr.mxu0 %v2890_v0 }
0x1e00   :  { %2545 = vmatpush3.msra.mxu0 %v3175_v26  ;;  %v2004_v16 = vld [vmem:[#allocation2 + $0x10] sm:$0xff] }
0x1e01   :  { %2560 = vmatprep.subr.mxu0 %v2890_v0 }
0x1eb9   :  { %v1560_v18 = vpop.f32.mrf.mxu0 }
0x1eba   :  { %v1564_v4 = vadd.f32 %v1560_v18, %v1160_v17 }
0x1ebb   :  { %v2526_v19 = vpop.f32.mrf.mxu0 }
0x1ebc   :  { %2692 = vtanh.f32 %v1564_v4  ;;  %v2233_v23 = vmul.f32 -1.442695, %v1564_v4  ;;  %v1175_v19 = vadd.f32 %v3222_v13, %v3249_v38 }
0x1ebe   :  { %2694 = vpow2.f32 %v2233_v23 }
0x1ec9   :  { %v2693_v21 = vpop.eup %2692 }
0x1eca   :  { %1574 = vrot.lane.b32.xlu0 %v2693_v21, %s2892_s3 }
0x1ecb   :  { %v2695_v7 = vpop.eup %2694 }
0x1ecc   :  { %v1568_v25 = vadd.f32 1.0, %v2695_v7 }
0x1ece   :  { %2696 = vrcp.f32 %v1568_v25 }
0x1edb   :  { %v2697_v10 = vpop.eup %2696 }
0x1edc   :  { %v1572_v11 = vmul.f32 %v2697_v10, %v1480_v9  ;;  %v2002_v9 = vld [vmem:[#allocation2] sm:$0xff] }
0x1f3c   :  { %v1575_v27 = vpop.permute.xlu0 %1574 }
0x1f3d   :  { %v1577_v29 = vmul.f32 %v2697_v10, %v1575_v27 }
0x1f3f   :  { %1579 = vrot.lane.b32.xlu1 %v1577_v29, %s2893_s14 }
0x1fb1   :  { %v1580_v30 = vpop.permute.xlu1 %1579 }
0x1fb2   :  { %v1582_v32 = vadd.f32 %v1580_v30, %v1572_v11 }
0x1fb4   :  { %2698 = vtanh.f32 %v1582_v32 }
0x1fc1   :  { %v2699_v24 = vpop.eup %2698 }
0x1fc2   :  { %1585 = vrot.lane.b32.xlu0 %v2699_v24, %s2892_s3 }
0x2034   :  { %v1586_v33 = vpop.permute.xlu0 %1585 }
0x2035   :  { %v1588_v22 = vmul.f32 %v2697_v10, %v1586_v33 }
0x2037   :  { %1590 = vrot.lane.b32.xlu1 %v1588_v22, %s2893_s14 }
0x20a9   :  { %v1591_v34 = vpop.permute.xlu1 %1590 }
0x20aa   :  { %1593 = vst.msk [vmem:[#allocation2 + $0x18] sm:$0xff] %vm270_vm2, %v1591_v34  ;;  %2536 = vmatmul.mubr.msk.f32.vlgmr.msra.gmra.mxu1 %vm270_vm2, %v1591_v34 }
0x20ab   :  { %2550 = vmatpush3.msra.mxu1 %v3165_v63  ;;  %2557 = vmatprep.mubr.msk.f32.mxu1 %vm2891_vm0, %v2890_v0 }
0x20ac   :  { %2551 = vmatprep.subr.mxu1 %v2890_v0 }
0x20ad   :  { %2552 = vmatpush3.msra.mxu1 %v3168_v1 }
0x20ae   :  { %2553 = vmatprep.subr.mxu1 %v2890_v0 }
0x20af   :  { %2554 = vmatpush3.msra.mxu1 %v3171_v2 }
0x20b0   :  { %2555 = vmatprep.subr.mxu1 %v2890_v0 }
0x20b1   :  { %2556 = vmatpush3.msra.mxu1 %v3175_v26  ;;  %v2005_v17 = vld [vmem:[#allocation2 + $0x18] sm:$0xff] }
0x20b2   :  { %2571 = vmatprep.subr.mxu1 %v2013_v61 }
0x216a   :  { %v1662_v40 = vpop.f32.mrf.mxu1 }
0x216b   :  { %v1666_v41 = vadd.f32 %v1662_v40, %v1165_v39 }
0x216c   :  { %v2537_v42 = vpop.f32.mrf.mxu1 }
0x216d   :  { %2700 = vtanh.f32 %v1666_v41  ;;  %v2235_v44 = vmul.f32 -1.442695, %v1666_v41  ;;  %v1180_v42 = vadd.f32 %v3247_v37, %v3222_v13 }
0x216f   :  { %2702 = vpow2.f32 %v2235_v44 }
0x217a   :  { %v2701_v43 = vpop.eup %2700 }
0x217b   :  { %1676 = vrot.lane.b32.xlu0 %v2701_v43, %s2892_s3 }
0x217c   :  { %v2703_v45 = vpop.eup %2702 }
0x217d   :  { %v1670_v3 = vadd.f32 1.0, %v2703_v45 }
0x217f   :  { %2704 = vrcp.f32 %v1670_v3 }
0x218c   :  { %v2705_v46 = vpop.eup %2704 }
0x218d   :  { %v1674_v48 = vmul.f32 %v2705_v46, %v1582_v32 }
0x21ed   :  { %v1677_v31 = vpop.permute.xlu0 %1676 }
0x21ee   :  { %v1679_v47 = vmul.f32 %v2705_v46, %v1677_v31 }
0x21f0   :  { %1681 = vrot.lane.b32.xlu1 %v1679_v47, %s2893_s14 }
0x2262   :  { %v1682_v49 = vpop.permute.xlu1 %1681 }
0x2263   :  { %v1684_v36 = vadd.f32 %v1682_v49, %v1674_v48 }
0x2265   :  { %2706 = vtanh.f32 %v1684_v36 }
0x2272   :  { %v2707_v20 = vpop.eup %2706 }
0x2273   :  { %1687 = vrot.lane.b32.xlu0 %v2707_v20, %s2892_s3 }
0x22e5   :  { %v1688_v50 = vpop.permute.xlu0 %1687 }
0x22e6   :  { %v1690_v51 = vmul.f32 %v2705_v46, %v1688_v50 }
0x22e8   :  { %1692 = vrot.lane.b32.xlu1 %v1690_v51, %s2893_s14 }
0x235a   :  { %v1693_v52 = vpop.permute.xlu1 %1692 }
0x235b   :  { %1695 = vst.msk [vmem:[#allocation2 + $0x20] sm:$0xff] %vm270_vm2, %v1693_v52  ;;  %2547 = vmatmul.mubr.msk.f32.vlgmr.msra.gmra.mxu0 %vm270_vm2, %v1693_v52 }
0x235c   :  { %2561 = vmatpush3.msra.mxu0 %v3165_v63  ;;  %2568 = vmatprep.mubr.msk.f32.mxu0 %vm2891_vm0, %v2890_v0 }
0x235d   :  { %2562 = vmatprep.subr.mxu0 %v2890_v0 }
0x235e   :  { %2563 = vmatpush3.msra.mxu0 %v3168_v1 }
0x235f   :  { %2564 = vmatprep.subr.mxu0 %v2890_v0 }
0x2360   :  { %2565 = vmatpush3.msra.mxu0 %v3171_v2 }
0x2361   :  { %2566 = vmatprep.subr.mxu0 %v2890_v0 }
0x2362   :  { %2567 = vmatpush3.msra.mxu0 %v3175_v26  ;;  %v2006_v18 = vld [vmem:[#allocation2 + $0x20] sm:$0xff] }
0x241b   :  { %v1764_v54 = vpop.f32.mrf.mxu0 }
0x241c   :  { %v1768_v63 = vadd.f32 %v1764_v54, %v1170_v53  ;;  %v2242_v54 = vld [vmem:[%s3372_s8] ss:$0 sm:$0xff]  ;;  %s2894_s8 = smov [#allocation14]  }
0x241d   :  { %v2548_v55 = vpop.f32.mrf.mxu0  ;;  %s2181_s20 = sshll.u32 %s2894_s8, 4  ;;  %s2182_s20 = int_to_ptr.vmem [resolvable:$true] %s2181_s20 }
0x241e   :  { %2708 = vtanh.f32 %v1768_v63  ;;  %v2237_v57 = vmul.f32 -1.442695, %v1768_v63  ;;  %s2852_s21 = scalar_lea.vmem %s2182_s20, 512  ;;  %p2857_p3 = scmp.lt.s32.totalorder %s2182_s20, %s2182_s20 }
0x241f   :  { %p2853_p2 = scmp.ne.s32.totalorder %s2182_s20, %s2852_s21  ;;  %p2858_p4 = scmp.lt.s32.totalorder %s2852_s21, %s2852_s21 }
0x2420   :  { %2710 = vpow2.f32 %v2237_v57 }
0x2421   :  { %p2859_p5 = por %p2858_p4, %p2857_p3 }
0x2423   :  { %p2860_p6 = pnand %p2859_p5, %p2853_p2 }
0x242b   :  { %v2709_v56 = vpop.eup %2708 }
0x242c   :  { %1778 = vrot.lane.b32.xlu0 %v2709_v56, %s2892_s3 }
0x242d   :  { %v2711_v1 = vpop.eup %2710 }
0x242e   :  { %v1772_v58 = vadd.f32 1.0, %v2711_v1 }
0x2430   :  { %2712 = vrcp.f32 %v1772_v58 }
0x243d   :  { %v2713_v2 = vpop.eup %2712 }
0x243e   :  { %v1776_v26 = vmul.f32 %v2713_v2, %v1684_v36 }
0x249e   :  { %v1779_v59 = vpop.permute.xlu0 %1778 }
0x249f   :  { %v1781_v0 = vmul.f32 %v2713_v2, %v1779_v59 }
0x24a1   :  { %1783 = vrot.lane.b32.xlu1 %v1781_v0, %s2893_s14 }
0x2513   :  { %v1784_v60 = vpop.permute.xlu1 %1783 }
0x2514   :  { %v1786_v35 = vadd.f32 %v1784_v60, %v1776_v26 }
0x2516   :  { %2714 = vtanh.f32 %v1786_v35 }
0x2523   :  { %v2715_v28 = vpop.eup %2714 }
0x2524   :  { %1789 = vrot.lane.b32.xlu0 %v2715_v28, %s2892_s3 }
0x2596   :  { %v1790_v62 = vpop.permute.xlu0 %1789 }
0x2597   :  { %v1792_v5 = vmul.f32 %v2713_v2, %v1790_v62 }
0x2599   :  { %1794 = vrot.lane.b32.xlu1 %v1792_v5, %s2893_s14 }
0x260b   :  { %v1795_v6 = vpop.permute.xlu1 %1794 }
0x260c   :  { %1797 = vst.msk [vmem:[#allocation2 + $0x28] sm:$0xff] %vm270_vm2, %v1795_v6  ;;  %2558 = vmatmul.mubr.msk.f32.vlgmr.msra.gmra.mxu1 %vm270_vm2, %v1795_v6 }
0x260d   :  { %2572 = vmatpush3.msra.mxu1 %v2013_v61  ;;  %2579 = vmatprep.mubr.msk.f32.mxu1 %vm270_vm2, %v2002_v9 }
0x260e   :  { %2573 = vmatprep.subr.mxu1 %v2012_v8 }
0x260f   :  { %2574 = vmatpush3.msra.mxu1 %v2012_v8 }
0x2610   :  { %2575 = vmatprep.subr.mxu1 %v2011_v12 }
0x2611   :  { %2576 = vmatpush3.msra.mxu1 %v2011_v12 }
0x2612   :  { %2577 = vmatprep.subr.mxu1 %v2010_v14 }
0x2613   :  { %2578 = vmatpush3.msra.mxu1 %v2010_v14  ;;  %v2007_v4 = vld [vmem:[#allocation2 + $0x28] sm:$0xff] }
0x2614   :  { %2580 = vmatmul.mubr.msk.f32.vlgmr.msra.gmra.mxu1 %vm270_vm2, %v2003_v15 }
0x2615   :  { %2582 = vmatprep.mubr.msk.f32.mxu1 %vm270_vm2, %v2004_v16 }
0x2618   :  { %2583 = vmatmul.mubr.msk.f32.gmra.mxu1 %vm270_vm2, %v2005_v17 }
0x2619   :  { %2585 = vmatprep.mubr.msk.f32.mxu1 %vm270_vm2, %v2006_v18 }
0x261c   :  { %2586 = vmatmul.mubr.msk.f32.gmra.mxu1 %vm270_vm2, %v2007_v4 }
0x26cc   :  { %v1866_v21 = vpop.f32.mrf.mxu1 }
0x26cd   :  { %v1870_v23 = vadd.f32 %v1866_v21, %v1175_v19 }
0x26ce   :  { %v2559_v7 = vpop.f32.mrf.mxu1 }
0x26cf   :  { %2716 = vtanh.f32 %v1870_v23  ;;  %v2239_v10 = vmul.f32 -1.442695, %v1870_v23 }
0x26d1   :  { %2718 = vpow2.f32 %v2239_v10 }
0x26d4   :  { %v2581_v37 = vpop.f32.mrf.mxu1 }
0x26d5   :  { %v2117_v55 = vadd.f32 %v2581_v37, %v2242_v54 }
0x26d6   :  { %v2111_v51 = vpop.f32.mrf.mxu1 }
0x26d7   :  { %v2112_v2 = vadd.f32 %v2242_v54, %v2111_v51 }
0x26d8   :  { %v2584_v52 = vpop.f32.mrf.mxu1 }
0x26d9   :  { %v2127_v26 = vadd.f32 %v2584_v52, %v2242_v54 }
0x26da   :  { %v2121_v63 = vpop.f32.mrf.mxu1 }
0x26db   :  { %v2122_v5 = vadd.f32 %v2242_v54, %v2121_v63 }
0x26dc   :  { %v2717_v25 = vpop.eup %2716  ;;  %v2587_v56 = vpop.f32.mrf.mxu1 }
0x26dd   :  { %1880 = vrot.lane.b32.xlu0 %v2717_v25, %s2892_s3  ;;  %v2137_v57 = vadd.f32 %v2587_v56, %v2242_v54 }
0x26de   :  { %v2719_v27 = vpop.eup %2718  ;;  %v2131_v59 = vpop.f32.mrf.mxu1 }
0x26df   :  { %v1874_v29 = vadd.f32 1.0, %v2719_v27 }
0x26e1   :  { %2720 = vrcp.f32 %v1874_v29 }
0x26ee   :  { %v2721_v11 = vpop.eup %2720 }
0x26ef   :  { %v1878_v24 = vmul.f32 %v2721_v11, %v1786_v35  ;;  %v2132_v35 = vadd.f32 %v2242_v54, %v2131_v59 }
0x274f   :  { %v1881_v30 = vpop.permute.xlu0 %1880 }
0x2750   :  { %v1883_v32 = vmul.f32 %v2721_v11, %v1881_v30 }
0x2752   :  { %1885 = vrot.lane.b32.xlu1 %v1883_v32, %s2893_s14 }
0x27c4   :  { %v1886_v33 = vpop.permute.xlu1 %1885 }
0x27c5   :  { %v1888_v38 = vadd.f32 %v1886_v33, %v1878_v24 }
0x27c7   :  { %2722 = vtanh.f32 %v1888_v38 }
0x27d4   :  { %v2723_v22 = vpop.eup %2722 }
0x27d5   :  { %1891 = vrot.lane.b32.xlu0 %v2723_v22, %s2892_s3 }
0x2847   :  { %v1892_v34 = vpop.permute.xlu0 %1891 }
0x2848   :  { %v1894_v39 = vmul.f32 %v2721_v11, %v1892_v34 }
0x284a   :  { %1896 = vrot.lane.b32.xlu1 %v1894_v39, %s2893_s14 }
0x28bc   :  { %v1897_v40 = vpop.permute.xlu1 %1896 }
0x28bd   :  { %1899 = vst.msk [vmem:[#allocation2 + $0x30] sm:$0xff] %vm270_vm2, %v1897_v40  ;;  %2569 = vmatmul.mubr.msk.f32.vlgmr.msra.gmra.mxu0 %vm270_vm2, %v1897_v40 }
0x28c4   :  { %v2008_v41 = vld [vmem:[#allocation2 + $0x30] sm:$0xff] }
0x28c5   :  { %2588 = vmatprep.mubr.msk.f32.mxu1 %vm270_vm2, %v2008_v41 }
0x297d   :  { %v1968_v43 = vpop.f32.mrf.mxu0 }
0x297e   :  { %v1972_v44 = vadd.f32 %v1968_v43, %v1180_v42 }
0x297f   :  { %v2570_v45 = vpop.f32.mrf.mxu0 }
0x2980   :  { %2724 = vtanh.f32 %v1972_v44  ;;  %v2241_v46 = vmul.f32 -1.442695, %v1972_v44 }
0x2982   :  { %2726 = vpow2.f32 %v2241_v46 }
0x298d   :  { %v2725_v3 = vpop.eup %2724 }
0x298e   :  { %1982 = vrot.lane.b32.xlu0 %v2725_v3, %s2892_s3 }
0x298f   :  { %v2727_v31 = vpop.eup %2726 }
0x2990   :  { %v1976_v47 = vadd.f32 1.0, %v2727_v31 }
0x2992   :  { %2728 = vrcp.f32 %v1976_v47 }
0x299f   :  { %v2729_v48 = vpop.eup %2728 }
0x29a0   :  { %v1980_v20 = vmul.f32 %v2729_v48, %v1888_v38 }
0x2a00   :  { %v1983_v49 = vpop.permute.xlu0 %1982 }
0x2a01   :  { %v1985_v36 = vmul.f32 %v2729_v48, %v1983_v49 }
0x2a03   :  { %1987 = vrot.lane.b32.xlu1 %v1985_v36, %s2893_s14 }
0x2a75   :  { %v1988_v50 = vpop.permute.xlu1 %1987 }
0x2a76   :  { %v1990_v13 = vadd.f32 %v1988_v50, %v1980_v20 }
0x2a78   :  { %2730 = vtanh.f32 %v1990_v13 }
0x2a85   :  { %v2731_v53 = vpop.eup %2730 }
0x2a86   :  { %1993 = vrot.lane.b32.xlu0 %v2731_v53, %s2892_s3 }
0x2a8a   :  { %2151 = vrot.lane.b32.xlu0 %v2117_v55, %s2892_s3 }
0x2a8e   :  { %2159 = vrot.lane.b32.xlu0 %v2137_v57, %s2892_s3 }
0x2af8   :  { %v1994_v1 = vpop.permute.xlu0 %1993 }
0x2af9   :  { %v1996_v58 = vmul.f32 %v2729_v48, %v1994_v1 }
0x2afb   :  { %1998 = vrot.lane.b32.xlu1 %v1996_v58, %s2893_s14 }
0x2afc   :  { %v2152_v0 = vpop.permute.xlu0 %2151 }
0x2afd   :  { %v2167_v60 = vsel %vm2166_vm3, %v2112_v2, %v2152_v0 }
0x2afe   :  { %2171 = vst [vmem:[#allocation14] sm:$0xff] %v2167_v60 }
0x2aff   :  { %2155 = vrot.lane.b32.xlu1 %v2127_v26, %s2892_s3 }
0x2b00   :  { %v2160_v61 = vpop.permute.xlu0 %2159 }
0x2b01   :  { %v2169_v28 = vsel %vm2166_vm3, %v2132_v35, %v2160_v61 }
0x2b02   :  { %2173 = vst [vmem:[#allocation14 + $0x10] sm:$0xff] %v2169_v28 }
0x2b6d   :  { %v1999_v62 = vpop.permute.xlu1 %1998 }
0x2b6e   :  { %2001 = vst.msk [vmem:[#allocation2 + $0x38] sm:$0xff] %vm270_vm2, %v1999_v62 }
0x2b71   :  { %v2156_v6 = vpop.permute.xlu1 %2155 }
0x2b72   :  { %v2168_v8 = vsel %vm2166_vm3, %v2122_v5, %v2156_v6 }
0x2b73   :  { %2172 = vst [vmem:[#allocation14 + $0x8] sm:$0xff] %v2168_v8 }
0x2b75   :  { %v2009_v9 = vld [vmem:[#allocation2 + $0x38] sm:$0xff] }
0x2b76   :  { %2589 = vmatmul.mubr.msk.f32.gmra.mxu1 %vm270_vm2, %v2009_v9 }
0x2c36   :  { %v2590_v12 = vpop.f32.mrf.mxu1 }
0x2c37   :  { %v2147_v14 = vadd.f32 %v2590_v12, %v2242_v54 }
0x2c38   :  { %v2141_v15 = vpop.f32.mrf.mxu1 }
0x2c39   :  { %2163 = vrot.lane.b32.xlu1 %v2147_v14, %s2892_s3  ;;  %v2142_v16 = vadd.f32 %v2242_v54, %v2141_v15 }
0x2cab   :  { %v2164_v17 = vpop.permute.xlu1 %2163 }
0x2cac   :  { %v2170_v18 = vsel %vm2166_vm3, %v2142_v16, %v2164_v17 }
0x2cad   :  { %2174 = vst [vmem:[#allocation14 + $0x18] sm:$0xff] %v2170_v18 }
0x2cae   :  { %2863 = shalt.err (!%p2860_p6)
}
0x2caf   :  { %2184 = dma.vmem_to_hbm [thread:$0]  %s2182_s20, 512, %s3373_s9, [#allocation5]  }
0x2cb0   :  { %2880 = dma.done.wait [#allocation5], 512  }
0x2cb1   :  { %2881 = vsyncadd [#allocation5], 4294966784 }
0x2cb2   :  { %2188 = vsyncpa [#allocation4], 1 }
0x2cb3   :  { %2189 = vsyncpa [#allocation7], 1 }
0x2cb4   :  { %2190 = vsyncpa [#allocation10], 1 }
0x2cb5   :  { %2191 = vsyncpa [#allocation13], 1 }
0x2cb6   :  { %2192 = vsyncpa [#allocation5], 1 }

</bundles_post_ra>
